<compile_context>
chip_gen: v6e
topology: v6e:2x2x1
jax: 0.10.0
libtpu: 0.0.40
codegen_flags: <defaults>
</compile_context>

<pallas_src>
import functools

import numpy as np
import jax
import jax.numpy as jnp
from jax.experimental import pallas as pl
from jax.experimental.pallas import tpu as pltpu


# --------------------------------------------------------------------------
# Host-side helpers mirroring pykan's spline utilities (init + reference only)
# --------------------------------------------------------------------------
def np_extend_grid(grid, k):
    h = (grid[:, -1:] - grid[:, :1]) / (grid.shape[1] - 1)
    for _ in range(k):
        grid = np.concatenate([grid[:, :1] - h, grid, grid[:, -1:] + h], axis=1)
    return grid


def np_B_batch(x, grid, k):
    # x: (size, batch), grid: (size, G+1)  ->  (size, G+k, batch)
    g = np_extend_grid(grid, k)
    B = ((x[:, None, :] >= g[:, :-1, None]) &
         (x[:, None, :] < g[:, 1:, None])).astype(np.float64)
    for p in range(1, k + 1):
        B = ((x[:, None, :] - g[:, :-(p + 1), None]) /
             (g[:, p:-1, None] - g[:, :-(p + 1), None]) * B[:, :-1]
             + (g[:, p + 1:, None] - x[:, None, :]) /
             (g[:, p + 1:, None] - g[:, 1:-p, None]) * B[:, 1:])
    return B


def np_curve2coef(x_eval, y_eval, grid, k):
    # least-squares fit of spline coefficients (per activation function)
    mat = np.transpose(np_B_batch(x_eval, grid, k), (0, 2, 1))  # (size, batch, G+k)
    size, _, nbasis = mat.shape
    coef = np.zeros((size, nbasis))
    for s in range(size):
        coef[s] = np.linalg.lstsq(mat[s], y_eval[s], rcond=None)[0]
    return coef


def init_kan_params(key, in_dim, out_dim, num, k, noise_scale=0.1,
                    scale_base=1.0, scale_sp=1.0, grid_range=(-1.0, 1.0)):
    """Deterministic re-implementation of KANLayer.__init__ parameter setup."""
    size = in_dim * out_dim
    grid = np.outer(np.ones(size),
                    np.linspace(grid_range[0], grid_range[1], num + 1))
    noises = (np.asarray(jax.random.uniform(key, (size, num + 1)),
                         dtype=np.float64) - 0.5) * noise_scale / num
    # TODO(synk): torch.linalg.lstsq (gelsy) vs numpy lstsq (SVD) may differ
    # for the underdetermined init system; both are valid deterministic inits.
    coef = np_curve2coef(grid, noises, grid, k)
    return dict(
        grid=jnp.asarray(grid, jnp.float32),                  # (size, num+1)
        coef=jnp.asarray(coef, jnp.float32),                  # (size, num+k)
        scale_base=jnp.full((size,), scale_base, jnp.float32),
        scale_sp=jnp.full((size,), scale_sp, jnp.float32),
        mask=jnp.ones((size,), jnp.float32),
    )


# --------------------------------------------------------------------------
# Small wrapper-side utilities
# --------------------------------------------------------------------------
def _round_up(x, m):
    return ((x + m - 1) // m) * m


def _extend_grid(grid, k):
    h = (grid[:, -1:] - grid[:, :1]) / (grid.shape[1] - 1)
    for _ in range(k):
        grid = jnp.concatenate([grid[:, :1] - h, grid, grid[:, -1:] + h], axis=1)
    return grid


def _deboor_recip_denoms(grid_ext, k):
    """Guarded reciprocals of all de Boor denominators.

    Columns enumerate (p, j) pairs of 1/(g[:, j+p] - g[:, j]) for p = 1..k,
    j = 0..n_grid-p-1, concatenated p-major.  Duplicate knots yield 0 (their
    contribution is dropped) instead of NaN/Inf; fine for uniform pykan grids.
    """
    cols = []
    for p in range(1, k + 1):
        den = grid_ext[:, p:] - grid_ext[:, :-p]          # (size, n_grid - p)
        cols.append(jnp.where(den == 0.0, 0.0, 1.0 / den))
    return jnp.concatenate(cols, axis=1)


def _tpu_tuning():
    """Best-effort generation query; conservative (v7x-like) fallback."""
    vmem = 64 << 20
    kind = ""
    try:
        v = getattr(pltpu.get_tpu_info(), "vmem_capacity_bytes", None)
        if v:
            vmem = int(v)
    except Exception:
        pass
    try:
        kind = jax.devices()[0].device_kind.lower()
    except Exception:
        pass
    likely_v7x = vmem <= (64 << 20) + (1 << 20)
    return vmem, kind, likely_v7x


# --------------------------------------------------------------------------
# Pallas kernel: B-spline eval + SiLU base + scale + in_dim reduction
# --------------------------------------------------------------------------
def kan_kernel(k, num, n_grid, n_den, with_aux,
               x_ref, par_ref, rep_ref, sel_ref, *out_refs):
    if with_aux:
        spline_ref, act_ref, ysum_ref = out_refs
    else:
        (ysum_ref,) = out_refs

    # column offsets inside the packed per-row parameter block
    GRID_OFF = 0
    RDEN_OFF = n_grid
    COEF_OFF = n_grid + n_den
    SBM_OFF = COEF_OFF + (num + k)
    SPM_OFF = SBM_OFF + 1

    par = par_ref[...]                                       # (size_pad, P)

    def col(c):
        return par[:, c:c + 1]

    # Replicate x rows across the out_dim groups with a tiny 0/1 MXU matmul
    # (avoids misaligned sublane concatenates; MXU is otherwise idle here).
    x = jnp.dot(rep_ref[...], x_ref[...],
                preferred_element_type=jnp.float32,
                precision=jax.lax.Precision.HIGHEST)         # (size_pad, B_TILE)

    # --- de Boor recursion, fully unrolled (num/k are small static consts) ---
    # Level 0 with shared comparisons: one (x >= g_j) per knot.
    # TODO(synk): for grid-refined configs (num >= ~10) switch to the
    # local-support evaluation (only k+1 nonzero bases per x) to bound the
    # VALU-op count and vreg pressure.
    ge = [x >= col(GRID_OFF + j) for j in range(n_grid)]
    basis = [jnp.where(jnp.logical_and(ge[j], jnp.logical_not(ge[j + 1])),
                       jnp.float32(1.0), jnp.float32(0.0))
             for j in range(n_grid - 1)]

    # Higher orders: denominator reciprocals precomputed -> multiplies only.
    off = 0
    for p in range(1, k + 1):
        new_basis = []
        for j in range(n_grid - p - 1):
            r1 = col(RDEN_OFF + off + j)          # 1/(g[j+p]   - g[j])
            r2 = col(RDEN_OFF + off + j + 1)      # 1/(g[j+p+1] - g[j+1])
            t1 = (x - col(GRID_OFF + j)) * r1 * basis[j]
            t2 = (col(GRID_OFF + j + p + 1) - x) * r2 * basis[j + 1]
            new_basis.append(t1 + t2)
        basis = new_basis
        off += n_grid - p

    # spline(x) = sum_j coef[:, j] * B_k[j](x)
    spline = jnp.zeros_like(x)
    for j in range(num + k):
        spline = spline + col(COEF_OFF + j) * basis[j]

    # SiLU base path: exp + approximate reciprocal both live on the EUP slot.
    base = x * pl.reciprocal(1.0 + jnp.exp(-x), approx=True)

    # mask already folded into the scales host-side (sbm = mk*sb, spm = mk*sp)
    act = col(SBM_OFF) * base + col(SPM_OFF) * spline

    # Sum over in_dim via block-diagonal selector matmul on the (idle) MXU;
    # HIGHEST keeps f32 accuracy (DEFAULT would truncate act to bf16).
    ysum_ref[...] = jnp.dot(sel_ref[...], act,
                            preferred_element_type=jnp.float32,
                            precision=jax.lax.Precision.HIGHEST)

    if with_aux:
        # TODO(synk): for size_pad >= 128 write these already transposed as
        # (b_tile, size_pad) blocks (XLU transpose) so the host-side
        # .T.reshape() round trip through HBM disappears.
        spline_ref[...] = spline
        act_ref[...] = act


def kan_forward(x, params, *, in_dim, out_dim, num, k, return_aux=True):
    """Returns (y, preacts, postacts, postspline) matching KANLayer.forward.

    With return_aux=False, postacts/postspline are not materialized (None) and
    the kernel writes only the (out_dim, B) sum -> much less HBM writeback.
    """
    x = x.astype(jnp.float32)
    batch = x.shape[0]
    size = in_dim * out_dim
    size_pad = _round_up(size, 8)
    out_pad = _round_up(out_dim, 8)
    in_pad = _round_up(in_dim, 8)
    n_grid = num + 1 + 2 * k

    # --- grid-invariant per-row params, packed into one array ----------------
    grid_ext = _extend_grid(params["grid"].astype(jnp.float32), k)  # (size, n_grid)
    grid_ext = jnp.pad(grid_ext, ((0, size_pad - size), (0, 0)), mode="edge")
    rden = _deboor_recip_denoms(grid_ext, k)                        # (size_pad, n_den)
    n_den = rden.shape[1]

    coef = jnp.pad(params["coef"].astype(jnp.float32),
                   ((0, size_pad - size), (0, 0)))
    mk = params["mask"].astype(jnp.float32)
    sbm = jnp.pad((params["scale_base"].astype(jnp.float32) * mk).reshape(size, 1),
                  ((0, size_pad - size), (0, 0)))
    spm = jnp.pad((params["scale_sp"].astype(jnp.float32) * mk).reshape(size, 1),
                  ((0, size_pad - size), (0, 0)))

    par = jnp.concatenate([grid_ext, rden, coef, sbm, spm], axis=1)
    n_par = par.shape[1]

    # 0/1 replication matrix: row s = o*in_dim + i selects x column i
    rep_np = np.zeros((size_pad, in_pad), np.float32)
    for o in range(out_dim):
        for i in range(in_dim):
            rep_np[o * in_dim + i, i] = 1.0
    rep = jnp.asarray(rep_np)

    # block-diagonal (out_pad, size_pad) selector of ones for the in_dim sum
    # TODO(synk): for realistic KAN widths (out_dim*in_dim in the tens of
    # thousands) add an out_dim grid axis so only a small selector block and
    # the matching act rows are live per step (dense selector is O(out*size)).
    sel_np = np.zeros((out_pad, size_pad), np.float32)
    for o in range(out_dim):
        sel_np[o, o * in_dim:(o + 1) * in_dim] = 1.0
    sel = jnp.asarray(sel_np)

    # --- generation-aware batch (lane) tiling --------------------------------
    vmem_bytes, kind, likely_v7x = _tpu_tuning()
    n_aux = 2 if return_aux else 0

    def live_bytes(bt):
        # unrolled basis working set + x/base/spline/act temporaries
        compute = (num + 2 * k + 8) * size_pad * bt * 4
        # double-buffered pipeline I/O (x in, aux + ysum out)
        io = (2 * in_pad + 2 * n_aux * size_pad + 2 * out_pad) * bt * 4
        # grid-invariant blocks (double-buffered by default)
        invariant = 2 * 4 * (size_pad * n_par + out_pad * size_pad
                             + size_pad * in_pad)
        return compute + io + invariant

    if likely_v7x:
        budget, vmem_limit, cap = (40 << 20), (48 << 20), 512
    else:
        budget = min(int(vmem_bytes * 0.6), 80 << 20)
        vmem_limit, cap = (96 << 20), 1024
    if "v5" in kind:
        cap = min(cap, 256)          # single vst slot / pricier spills on v5e
    if size_pad <= 8:
        cap = min(cap, 256)          # keep the unrolled bases within 64 vregs

    b_pad128 = _round_up(batch, 128)
    if likely_v7x and batch >= 256:
        # guarantee >=2 grid steps so "parallel" actually splits across the 2 TCs
        cap = min(cap, _round_up(pl.cdiv(b_pad128, 2), 128))

    b_tile = 128                      # fallback (minimum lane-dense tile)
    for t in (1024, 512, 256, 128):
        if t > cap or live_bytes(t) > budget:
            continue
        padded = _round_up(b_pad128, t)
        waste = (padded - min(batch, padded)) / padded
        if waste <= 0.125:
            b_tile = t
            break
    # TODO(synk): if even b_tile=128 exceeds the VMEM budget (very large
    # size_pad), add an out_dim grid axis instead of shrinking lanes below 128.
    b_pad = _round_up(b_pad128, b_tile)
    n_btiles = b_pad // b_tile

    # x passed once, un-duplicated: (in_pad, B_pad)
    x_pad = jnp.pad(x.T, ((0, in_pad - in_dim), (0, b_pad - batch)))

    in_specs = [
        pl.BlockSpec((in_pad, b_tile), lambda b: (0, b)),     # x (batch-tiled)
        pl.BlockSpec((size_pad, n_par), lambda b: (0, 0)),    # packed row params
        pl.BlockSpec((size_pad, in_pad), lambda b: (0, 0)),   # replication matrix
        pl.BlockSpec((out_pad, size_pad), lambda b: (0, 0)),  # in_dim-sum selector
    ]

    if return_aux:
        out_shape = (
            jax.ShapeDtypeStruct((size_pad, b_pad), jnp.float32),
            jax.ShapeDtypeStruct((size_pad, b_pad), jnp.float32),
            jax.ShapeDtypeStruct((out_pad, b_pad), jnp.float32),
        )
        out_specs = (
            pl.BlockSpec((size_pad, b_tile), lambda b: (0, b)),
            pl.BlockSpec((size_pad, b_tile), lambda b: (0, b)),
            pl.BlockSpec((out_pad, b_tile), lambda b: (0, b)),
        )
    else:
        out_shape = jax.ShapeDtypeStruct((out_pad, b_pad), jnp.float32)
        out_specs = pl.BlockSpec((out_pad, b_tile), lambda b: (0, b))

    kernel = functools.partial(kan_kernel, k, num, n_grid, n_den, return_aux)
    outs = pl.pallas_call(
        kernel,
        grid=(n_btiles,),
        out_shape=out_shape,
        in_specs=in_specs,
        out_specs=out_specs,
        compiler_params=pltpu.CompilerParams(
            dimension_semantics=("parallel",),
            vmem_limit_bytes=vmem_limit),
    )(x_pad, par, rep, sel)

    # preacts is just a broadcast of x (torch einsum expansion) -> no kernel work
    preacts = jnp.broadcast_to(x[:, None, :], (batch, out_dim, in_dim))

    if return_aux:
        spline_p, act_p, ysum_p = outs
        postspline = spline_p[:size, :batch].T.reshape(batch, out_dim, in_dim)
        postacts = act_p[:size, :batch].T.reshape(batch, out_dim, in_dim)
        y = ysum_p[:out_dim, :batch].T                       # (batch, out_dim)
        return y, preacts, postacts, postspline
    else:
        y = outs[:out_dim, :batch].T
        return y, preacts, None, None


# --------------------------------------------------------------------------
# Pure NumPy reference of the forward pass (for correctness check)
# --------------------------------------------------------------------------
def np_forward(x, params, in_dim, out_dim, num, k):
    x = np.asarray(x, np.float64)
    batch = x.shape[0]
    x_exp = np.tile(x, (1, out_dim)).T                         # (size, batch)
    grid = np.asarray(params["grid"], np.float64)
    coef = np.asarray(params["coef"], np.float64)
    Bk = np_B_batch(x_exp, grid, k)                            # (size, G+k, batch)
    spline = np.einsum('ij,ijk->ik', coef, Bk)                 # (size, batch)
    base = x_exp / (1.0 + np.exp(-x_exp))
    sb = np.asarray(params["scale_base"], np.float64)[:, None]
    sp = np.asarray(params["scale_sp"], np.float64)[:, None]
    mk = np.asarray(params["mask"], np.float64)[:, None]
    act = mk * (sb * base + sp * spline)
    preacts = x_exp.T.reshape(batch, out_dim, in_dim)
    postspline = spline.T.reshape(batch, out_dim, in_dim)
    postacts = act.T.reshape(batch, out_dim, in_dim)
    y = postacts.sum(axis=2)
    return y, preacts, postacts, postspline


if __name__ == "__main__":
    in_dim, out_dim, num, k = 3, 2, 5, 3
    batch = 8

    key = jax.random.PRNGKey(0)
    k_param, k_x = jax.random.split(key)

    params = init_kan_params(k_param, in_dim, out_dim, num, k)
    x = jax.random.uniform(k_x, (batch, in_dim), minval=-1.0, maxval=1.0,
                           dtype=jnp.float32)

    y, preacts, postacts, postspline = kan_forward(
        x, params, in_dim=in_dim, out_dim=out_dim, num=num, k=k,
        return_aux=True)
    jax.block_until_ready((y, preacts, postacts, postspline))

    # y-only variant (no aux writeback)
    y2, _, _, _ = kan_forward(
        x, params, in_dim=in_dim, out_dim=out_dim, num=num, k=k,
        return_aux=False)
    jax.block_until_ready(y2)

    # sanity check against the NumPy reference of the torch semantics
    # (relaxed tolerance: SiLU base uses the EUP approximate reciprocal;
    #  everything else is f32-exact to within HIGHEST-precision matmul error)
    y_r, pre_r, post_r, psp_r = np_forward(np.asarray(x), params,
                                           in_dim, out_dim, num, k)
    np.testing.assert_allclose(np.asarray(y), y_r, rtol=2e-3, atol=1e-3)
    np.testing.assert_allclose(np.asarray(preacts), pre_r, rtol=2e-3, atol=1e-3)
    np.testing.assert_allclose(np.asarray(postacts), post_r, rtol=2e-3, atol=1e-3)
    np.testing.assert_allclose(np.asarray(postspline), psp_r, rtol=2e-3, atol=1e-3)
    np.testing.assert_allclose(np.asarray(y2), y_r, rtol=2e-3, atol=1e-3)

    print("KERNEL_OK")
</pallas_src>

<mosaic_0001>
module attributes {stable_mosaic.version = 11 : i64} {
  func.func @kan_kernel(%arg0: i32, %arg1: memref<8x128xf32, #tpu.memory_space<vmem>>, %arg2: memref<8x52xf32, #tpu.memory_space<vmem>>, %arg3: memref<8x8xf32, #tpu.memory_space<vmem>>, %arg4: memref<8x8xf32, #tpu.memory_space<vmem>>, %arg5: memref<8x128xf32, #tpu.memory_space<vmem>>, %arg6: memref<8x128xf32, #tpu.memory_space<vmem>>, %arg7: memref<8x128xf32, #tpu.memory_space<vmem>>) attributes {dimension_semantics = [#tpu.dimension_semantics<parallel>], iteration_bounds = array<i64: 1>, scalar_prefetch = 0 : i64, scratch_operands = 0 : i64, tpu.core_type = #tpu.core_type<tc>, window_params = [{transform_indices = @transform_0, window_bounds = array<i64: 8, 128>}, {pipeline_mode = #tpu.pipeline_mode<synchronous>, transform_indices = @transform_1, window_bounds = array<i64: 8, 52>}, {pipeline_mode = #tpu.pipeline_mode<synchronous>, transform_indices = @transform_2, window_bounds = array<i64: 8, 8>}, {pipeline_mode = #tpu.pipeline_mode<synchronous>, transform_indices = @transform_3, window_bounds = array<i64: 8, 8>}, {transform_indices = @transform_4, window_bounds = array<i64: 8, 128>}, {transform_indices = @transform_5, window_bounds = array<i64: 8, 128>}, {transform_indices = @transform_6, window_bounds = array<i64: 8, 128>}]} {
    %c0 = arith.constant 0 : index
    %c0_0 = arith.constant 0 : index
    %0 = vector.load %arg2[%c0, %c0_0] : memref<8x52xf32, #tpu.memory_space<vmem>>, vector<8x52xf32>
    %c0_1 = arith.constant 0 : index
    %c0_2 = arith.constant 0 : index
    %1 = vector.load %arg3[%c0_1, %c0_2] : memref<8x8xf32, #tpu.memory_space<vmem>>, vector<8x8xf32>
    %c0_3 = arith.constant 0 : index
    %c0_4 = arith.constant 0 : index
    %2 = vector.load %arg1[%c0_3, %c0_4] : memref<8x128xf32, #tpu.memory_space<vmem>>, vector<8x128xf32>
    %cst = arith.constant dense<0.000000e+00> : vector<8x128xf32>
    %3 = tpu.matmul %1, %2, %cst {dimension_numbers = #tpu.dot_dimension_numbers<[1], [0], [0], [1], [0, 0, 1, 1], [], []>, precision = #tpu.contract_precision<fp32>} : vector<8x8xf32>, vector<8x128xf32>, vector<8x128xf32> -> vector<8x128xf32>
    %4 = vector.extract_strided_slice %0 {offsets = [0, 0], sizes = [8, 1], strides = [1, 1]} : vector<8x52xf32> to vector<8x1xf32>
    %5 = vector.broadcast %4 : vector<8x1xf32> to vector<8x128xf32>
    %6 = arith.cmpf oge, %3, %5 : vector<8x128xf32>
    %7 = vector.extract_strided_slice %0 {offsets = [0, 1], sizes = [8, 1], strides = [1, 1]} : vector<8x52xf32> to vector<8x1xf32>
    %8 = vector.broadcast %7 : vector<8x1xf32> to vector<8x128xf32>
    %9 = arith.cmpf oge, %3, %8 : vector<8x128xf32>
    %10 = vector.extract_strided_slice %0 {offsets = [0, 2], sizes = [8, 1], strides = [1, 1]} : vector<8x52xf32> to vector<8x1xf32>
    %11 = vector.broadcast %10 : vector<8x1xf32> to vector<8x128xf32>
    %12 = arith.cmpf oge, %3, %11 : vector<8x128xf32>
    %13 = vector.extract_strided_slice %0 {offsets = [0, 3], sizes = [8, 1], strides = [1, 1]} : vector<8x52xf32> to vector<8x1xf32>
    %14 = vector.broadcast %13 : vector<8x1xf32> to vector<8x128xf32>
    %15 = arith.cmpf oge, %3, %14 : vector<8x128xf32>
    %16 = vector.extract_strided_slice %0 {offsets = [0, 4], sizes = [8, 1], strides = [1, 1]} : vector<8x52xf32> to vector<8x1xf32>
    %17 = vector.broadcast %16 : vector<8x1xf32> to vector<8x128xf32>
    %18 = arith.cmpf oge, %3, %17 : vector<8x128xf32>
    %19 = vector.extract_strided_slice %0 {offsets = [0, 5], sizes = [8, 1], strides = [1, 1]} : vector<8x52xf32> to vector<8x1xf32>
    %20 = vector.broadcast %19 : vector<8x1xf32> to vector<8x128xf32>
    %21 = arith.cmpf oge, %3, %20 : vector<8x128xf32>
    %22 = vector.extract_strided_slice %0 {offsets = [0, 6], sizes = [8, 1], strides = [1, 1]} : vector<8x52xf32> to vector<8x1xf32>
    %23 = vector.broadcast %22 : vector<8x1xf32> to vector<8x128xf32>
    %24 = arith.cmpf oge, %3, %23 : vector<8x128xf32>
    %25 = vector.extract_strided_slice %0 {offsets = [0, 7], sizes = [8, 1], strides = [1, 1]} : vector<8x52xf32> to vector<8x1xf32>
    %26 = vector.broadcast %25 : vector<8x1xf32> to vector<8x128xf32>
    %27 = arith.cmpf oge, %3, %26 : vector<8x128xf32>
    %28 = vector.extract_strided_slice %0 {offsets = [0, 8], sizes = [8, 1], strides = [1, 1]} : vector<8x52xf32> to vector<8x1xf32>
    %29 = vector.broadcast %28 : vector<8x1xf32> to vector<8x128xf32>
    %30 = arith.cmpf oge, %3, %29 : vector<8x128xf32>
    %31 = vector.extract_strided_slice %0 {offsets = [0, 9], sizes = [8, 1], strides = [1, 1]} : vector<8x52xf32> to vector<8x1xf32>
    %32 = vector.broadcast %31 : vector<8x1xf32> to vector<8x128xf32>
    %33 = arith.cmpf oge, %3, %32 : vector<8x128xf32>
    %34 = vector.extract_strided_slice %0 {offsets = [0, 10], sizes = [8, 1], strides = [1, 1]} : vector<8x52xf32> to vector<8x1xf32>
    %35 = vector.broadcast %34 : vector<8x1xf32> to vector<8x128xf32>
    %36 = arith.cmpf oge, %3, %35 : vector<8x128xf32>
    %37 = vector.extract_strided_slice %0 {offsets = [0, 11], sizes = [8, 1], strides = [1, 1]} : vector<8x52xf32> to vector<8x1xf32>
    %38 = vector.broadcast %37 : vector<8x1xf32> to vector<8x128xf32>
    %39 = arith.cmpf oge, %3, %38 : vector<8x128xf32>
    %cst_5 = arith.constant dense<true> : vector<8x128xi1>
    %40 = arith.xori %9, %cst_5 : vector<8x128xi1>
    %41 = arith.andi %6, %40 : vector<8x128xi1>
    %cst_6 = arith.constant 1.000000e+00 : f32
    %cst_7 = arith.constant 0.000000e+00 : f32
    %42 = vector.broadcast %cst_6 : f32 to vector<8x128xf32>
    %43 = vector.broadcast %cst_7 : f32 to vector<8x128xf32>
    %44 = arith.select %41, %42, %43 : vector<8x128xi1>, vector<8x128xf32>
    %cst_8 = arith.constant dense<true> : vector<8x128xi1>
    %45 = arith.xori %12, %cst_8 : vector<8x128xi1>
    %46 = arith.andi %9, %45 : vector<8x128xi1>
    %cst_9 = arith.constant 1.000000e+00 : f32
    %cst_10 = arith.constant 0.000000e+00 : f32
    %47 = vector.broadcast %cst_9 : f32 to vector<8x128xf32>
    %48 = vector.broadcast %cst_10 : f32 to vector<8x128xf32>
    %49 = arith.select %46, %47, %48 : vector<8x128xi1>, vector<8x128xf32>
    %cst_11 = arith.constant dense<true> : vector<8x128xi1>
    %50 = arith.xori %15, %cst_11 : vector<8x128xi1>
    %51 = arith.andi %12, %50 : vector<8x128xi1>
    %cst_12 = arith.constant 1.000000e+00 : f32
    %cst_13 = arith.constant 0.000000e+00 : f32
    %52 = vector.broadcast %cst_12 : f32 to vector<8x128xf32>
    %53 = vector.broadcast %cst_13 : f32 to vector<8x128xf32>
    %54 = arith.select %51, %52, %53 : vector<8x128xi1>, vector<8x128xf32>
    %cst_14 = arith.constant dense<true> : vector<8x128xi1>
    %55 = arith.xori %18, %cst_14 : vector<8x128xi1>
    %56 = arith.andi %15, %55 : vector<8x128xi1>
    %cst_15 = arith.constant 1.000000e+00 : f32
    %cst_16 = arith.constant 0.000000e+00 : f32
    %57 = vector.broadcast %cst_15 : f32 to vector<8x128xf32>
    %58 = vector.broadcast %cst_16 : f32 to vector<8x128xf32>
    %59 = arith.select %56, %57, %58 : vector<8x128xi1>, vector<8x128xf32>
    %cst_17 = arith.constant dense<true> : vector<8x128xi1>
    %60 = arith.xori %21, %cst_17 : vector<8x128xi1>
    %61 = arith.andi %18, %60 : vector<8x128xi1>
    %cst_18 = arith.constant 1.000000e+00 : f32
    %cst_19 = arith.constant 0.000000e+00 : f32
    %62 = vector.broadcast %cst_18 : f32 to vector<8x128xf32>
    %63 = vector.broadcast %cst_19 : f32 to vector<8x128xf32>
    %64 = arith.select %61, %62, %63 : vector<8x128xi1>, vector<8x128xf32>
    %cst_20 = arith.constant dense<true> : vector<8x128xi1>
    %65 = arith.xori %24, %cst_20 : vector<8x128xi1>
    %66 = arith.andi %21, %65 : vector<8x128xi1>
    %cst_21 = arith.constant 1.000000e+00 : f32
    %cst_22 = arith.constant 0.000000e+00 : f32
    %67 = vector.broadcast %cst_21 : f32 to vector<8x128xf32>
    %68 = vector.broadcast %cst_22 : f32 to vector<8x128xf32>
    %69 = arith.select %66, %67, %68 : vector<8x128xi1>, vector<8x128xf32>
    %cst_23 = arith.constant dense<true> : vector<8x128xi1>
    %70 = arith.xori %27, %cst_23 : vector<8x128xi1>
    %71 = arith.andi %24, %70 : vector<8x128xi1>
    %cst_24 = arith.constant 1.000000e+00 : f32
    %cst_25 = arith.constant 0.000000e+00 : f32
    %72 = vector.broadcast %cst_24 : f32 to vector<8x128xf32>
    %73 = vector.broadcast %cst_25 : f32 to vector<8x128xf32>
    %74 = arith.select %71, %72, %73 : vector<8x128xi1>, vector<8x128xf32>
    %cst_26 = arith.constant dense<true> : vector<8x128xi1>
    %75 = arith.xori %30, %cst_26 : vector<8x128xi1>
    %76 = arith.andi %27, %75 : vector<8x128xi1>
    %cst_27 = arith.constant 1.000000e+00 : f32
    %cst_28 = arith.constant 0.000000e+00 : f32
    %77 = vector.broadcast %cst_27 : f32 to vector<8x128xf32>
    %78 = vector.broadcast %cst_28 : f32 to vector<8x128xf32>
    %79 = arith.select %76, %77, %78 : vector<8x128xi1>, vector<8x128xf32>
    %cst_29 = arith.constant dense<true> : vector<8x128xi1>
    %80 = arith.xori %33, %cst_29 : vector<8x128xi1>
    %81 = arith.andi %30, %80 : vector<8x128xi1>
    %cst_30 = arith.constant 1.000000e+00 : f32
    %cst_31 = arith.constant 0.000000e+00 : f32
    %82 = vector.broadcast %cst_30 : f32 to vector<8x128xf32>
    %83 = vector.broadcast %cst_31 : f32 to vector<8x128xf32>
    %84 = arith.select %81, %82, %83 : vector<8x128xi1>, vector<8x128xf32>
    %cst_32 = arith.constant dense<true> : vector<8x128xi1>
    %85 = arith.xori %36, %cst_32 : vector<8x128xi1>
    %86 = arith.andi %33, %85 : vector<8x128xi1>
    %cst_33 = arith.constant 1.000000e+00 : f32
    %cst_34 = arith.constant 0.000000e+00 : f32
    %87 = vector.broadcast %cst_33 : f32 to vector<8x128xf32>
    %88 = vector.broadcast %cst_34 : f32 to vector<8x128xf32>
    %89 = arith.select %86, %87, %88 : vector<8x128xi1>, vector<8x128xf32>
    %cst_35 = arith.constant dense<true> : vector<8x128xi1>
    %90 = arith.xori %39, %cst_35 : vector<8x128xi1>
    %91 = arith.andi %36, %90 : vector<8x128xi1>
    %cst_36 = arith.constant 1.000000e+00 : f32
    %cst_37 = arith.constant 0.000000e+00 : f32
    %92 = vector.broadcast %cst_36 : f32 to vector<8x128xf32>
    %93 = vector.broadcast %cst_37 : f32 to vector<8x128xf32>
    %94 = arith.select %91, %92, %93 : vector<8x128xi1>, vector<8x128xf32>
    %95 = vector.extract_strided_slice %0 {offsets = [0, 12], sizes = [8, 1], strides = [1, 1]} : vector<8x52xf32> to vector<8x1xf32>
    %96 = vector.extract_strided_slice %0 {offsets = [0, 13], sizes = [8, 1], strides = [1, 1]} : vector<8x52xf32> to vector<8x1xf32>
    %97 = vector.extract_strided_slice %0 {offsets = [0, 0], sizes = [8, 1], strides = [1, 1]} : vector<8x52xf32> to vector<8x1xf32>
    %98 = vector.broadcast %97 : vector<8x1xf32> to vector<8x128xf32>
    %99 = arith.subf %3, %98 : vector<8x128xf32>
    %100 = vector.broadcast %95 : vector<8x1xf32> to vector<8x128xf32>
    %101 = arith.mulf %99, %100 : vector<8x128xf32>
    %102 = arith.mulf %101, %44 : vector<8x128xf32>
    %103 = vector.extract_strided_slice %0 {offsets = [0, 2], sizes = [8, 1], strides = [1, 1]} : vector<8x52xf32> to vector<8x1xf32>
    %104 = vector.broadcast %103 : vector<8x1xf32> to vector<8x128xf32>
    %105 = arith.subf %104, %3 : vector<8x128xf32>
    %106 = vector.broadcast %96 : vector<8x1xf32> to vector<8x128xf32>
    %107 = arith.mulf %105, %106 : vector<8x128xf32>
    %108 = arith.mulf %107, %49 : vector<8x128xf32>
    %109 = arith.addf %102, %108 : vector<8x128xf32>
    %110 = vector.extract_strided_slice %0 {offsets = [0, 13], sizes = [8, 1], strides = [1, 1]} : vector<8x52xf32> to vector<8x1xf32>
    %111 = vector.extract_strided_slice %0 {offsets = [0, 14], sizes = [8, 1], strides = [1, 1]} : vector<8x52xf32> to vector<8x1xf32>
    %112 = vector.extract_strided_slice %0 {offsets = [0, 1], sizes = [8, 1], strides = [1, 1]} : vector<8x52xf32> to vector<8x1xf32>
    %113 = vector.broadcast %112 : vector<8x1xf32> to vector<8x128xf32>
    %114 = arith.subf %3, %113 : vector<8x128xf32>
    %115 = vector.broadcast %110 : vector<8x1xf32> to vector<8x128xf32>
    %116 = arith.mulf %114, %115 : vector<8x128xf32>
    %117 = arith.mulf %116, %49 : vector<8x128xf32>
    %118 = vector.extract_strided_slice %0 {offsets = [0, 3], sizes = [8, 1], strides = [1, 1]} : vector<8x52xf32> to vector<8x1xf32>
    %119 = vector.broadcast %118 : vector<8x1xf32> to vector<8x128xf32>
    %120 = arith.subf %119, %3 : vector<8x128xf32>
    %121 = vector.broadcast %111 : vector<8x1xf32> to vector<8x128xf32>
    %122 = arith.mulf %120, %121 : vector<8x128xf32>
    %123 = arith.mulf %122, %54 : vector<8x128xf32>
    %124 = arith.addf %117, %123 : vector<8x128xf32>
    %125 = vector.extract_strided_slice %0 {offsets = [0, 14], sizes = [8, 1], strides = [1, 1]} : vector<8x52xf32> to vector<8x1xf32>
    %126 = vector.extract_strided_slice %0 {offsets = [0, 15], sizes = [8, 1], strides = [1, 1]} : vector<8x52xf32> to vector<8x1xf32>
    %127 = vector.extract_strided_slice %0 {offsets = [0, 2], sizes = [8, 1], strides = [1, 1]} : vector<8x52xf32> to vector<8x1xf32>
    %128 = vector.broadcast %127 : vector<8x1xf32> to vector<8x128xf32>
    %129 = arith.subf %3, %128 : vector<8x128xf32>
    %130 = vector.broadcast %125 : vector<8x1xf32> to vector<8x128xf32>
    %131 = arith.mulf %129, %130 : vector<8x128xf32>
    %132 = arith.mulf %131, %54 : vector<8x128xf32>
    %133 = vector.extract_strided_slice %0 {offsets = [0, 4], sizes = [8, 1], strides = [1, 1]} : vector<8x52xf32> to vector<8x1xf32>
    %134 = vector.broadcast %133 : vector<8x1xf32> to vector<8x128xf32>
    %135 = arith.subf %134, %3 : vector<8x128xf32>
    %136 = vector.broadcast %126 : vector<8x1xf32> to vector<8x128xf32>
    %137 = arith.mulf %135, %136 : vector<8x128xf32>
    %138 = arith.mulf %137, %59 : vector<8x128xf32>
    %139 = arith.addf %132, %138 : vector<8x128xf32>
    %140 = vector.extract_strided_slice %0 {offsets = [0, 15], sizes = [8, 1], strides = [1, 1]} : vector<8x52xf32> to vector<8x1xf32>
    %141 = vector.extract_strided_slice %0 {offsets = [0, 16], sizes = [8, 1], strides = [1, 1]} : vector<8x52xf32> to vector<8x1xf32>
    %142 = vector.extract_strided_slice %0 {offsets = [0, 3], sizes = [8, 1], strides = [1, 1]} : vector<8x52xf32> to vector<8x1xf32>
    %143 = vector.broadcast %142 : vector<8x1xf32> to vector<8x128xf32>
    %144 = arith.subf %3, %143 : vector<8x128xf32>
    %145 = vector.broadcast %140 : vector<8x1xf32> to vector<8x128xf32>
    %146 = arith.mulf %144, %145 : vector<8x128xf32>
    %147 = arith.mulf %146, %59 : vector<8x128xf32>
    %148 = vector.extract_strided_slice %0 {offsets = [0, 5], sizes = [8, 1], strides = [1, 1]} : vector<8x52xf32> to vector<8x1xf32>
    %149 = vector.broadcast %148 : vector<8x1xf32> to vector<8x128xf32>
    %150 = arith.subf %149, %3 : vector<8x128xf32>
    %151 = vector.broadcast %141 : vector<8x1xf32> to vector<8x128xf32>
    %152 = arith.mulf %150, %151 : vector<8x128xf32>
    %153 = arith.mulf %152, %64 : vector<8x128xf32>
    %154 = arith.addf %147, %153 : vector<8x128xf32>
    %155 = vector.extract_strided_slice %0 {offsets = [0, 16], sizes = [8, 1], strides = [1, 1]} : vector<8x52xf32> to vector<8x1xf32>
    %156 = vector.extract_strided_slice %0 {offsets = [0, 17], sizes = [8, 1], strides = [1, 1]} : vector<8x52xf32> to vector<8x1xf32>
    %157 = vector.extract_strided_slice %0 {offsets = [0, 4], sizes = [8, 1], strides = [1, 1]} : vector<8x52xf32> to vector<8x1xf32>
    %158 = vector.broadcast %157 : vector<8x1xf32> to vector<8x128xf32>
    %159 = arith.subf %3, %158 : vector<8x128xf32>
    %160 = vector.broadcast %155 : vector<8x1xf32> to vector<8x128xf32>
    %161 = arith.mulf %159, %160 : vector<8x128xf32>
    %162 = arith.mulf %161, %64 : vector<8x128xf32>
    %163 = vector.extract_strided_slice %0 {offsets = [0, 6], sizes = [8, 1], strides = [1, 1]} : vector<8x52xf32> to vector<8x1xf32>
    %164 = vector.broadcast %163 : vector<8x1xf32> to vector<8x128xf32>
    %165 = arith.subf %164, %3 : vector<8x128xf32>
    %166 = vector.broadcast %156 : vector<8x1xf32> to vector<8x128xf32>
    %167 = arith.mulf %165, %166 : vector<8x128xf32>
    %168 = arith.mulf %167, %69 : vector<8x128xf32>
    %169 = arith.addf %162, %168 : vector<8x128xf32>
    %170 = vector.extract_strided_slice %0 {offsets = [0, 17], sizes = [8, 1], strides = [1, 1]} : vector<8x52xf32> to vector<8x1xf32>
    %171 = vector.extract_strided_slice %0 {offsets = [0, 18], sizes = [8, 1], strides = [1, 1]} : vector<8x52xf32> to vector<8x1xf32>
    %172 = vector.extract_strided_slice %0 {offsets = [0, 5], sizes = [8, 1], strides = [1, 1]} : vector<8x52xf32> to vector<8x1xf32>
    %173 = vector.broadcast %172 : vector<8x1xf32> to vector<8x128xf32>
    %174 = arith.subf %3, %173 : vector<8x128xf32>
    %175 = vector.broadcast %170 : vector<8x1xf32> to vector<8x128xf32>
    %176 = arith.mulf %174, %175 : vector<8x128xf32>
    %177 = arith.mulf %176, %69 : vector<8x128xf32>
    %178 = vector.extract_strided_slice %0 {offsets = [0, 7], sizes = [8, 1], strides = [1, 1]} : vector<8x52xf32> to vector<8x1xf32>
    %179 = vector.broadcast %178 : vector<8x1xf32> to vector<8x128xf32>
    %180 = arith.subf %179, %3 : vector<8x128xf32>
    %181 = vector.broadcast %171 : vector<8x1xf32> to vector<8x128xf32>
    %182 = arith.mulf %180, %181 : vector<8x128xf32>
    %183 = arith.mulf %182, %74 : vector<8x128xf32>
    %184 = arith.addf %177, %183 : vector<8x128xf32>
    %185 = vector.extract_strided_slice %0 {offsets = [0, 18], sizes = [8, 1], strides = [1, 1]} : vector<8x52xf32> to vector<8x1xf32>
    %186 = vector.extract_strided_slice %0 {offsets = [0, 19], sizes = [8, 1], strides = [1, 1]} : vector<8x52xf32> to vector<8x1xf32>
    %187 = vector.extract_strided_slice %0 {offsets = [0, 6], sizes = [8, 1], strides = [1, 1]} : vector<8x52xf32> to vector<8x1xf32>
    %188 = vector.broadcast %187 : vector<8x1xf32> to vector<8x128xf32>
    %189 = arith.subf %3, %188 : vector<8x128xf32>
    %190 = vector.broadcast %185 : vector<8x1xf32> to vector<8x128xf32>
    %191 = arith.mulf %189, %190 : vector<8x128xf32>
    %192 = arith.mulf %191, %74 : vector<8x128xf32>
    %193 = vector.extract_strided_slice %0 {offsets = [0, 8], sizes = [8, 1], strides = [1, 1]} : vector<8x52xf32> to vector<8x1xf32>
    %194 = vector.broadcast %193 : vector<8x1xf32> to vector<8x128xf32>
    %195 = arith.subf %194, %3 : vector<8x128xf32>
    %196 = vector.broadcast %186 : vector<8x1xf32> to vector<8x128xf32>
    %197 = arith.mulf %195, %196 : vector<8x128xf32>
    %198 = arith.mulf %197, %79 : vector<8x128xf32>
    %199 = arith.addf %192, %198 : vector<8x128xf32>
    %200 = vector.extract_strided_slice %0 {offsets = [0, 19], sizes = [8, 1], strides = [1, 1]} : vector<8x52xf32> to vector<8x1xf32>
    %201 = vector.extract_strided_slice %0 {offsets = [0, 20], sizes = [8, 1], strides = [1, 1]} : vector<8x52xf32> to vector<8x1xf32>
    %202 = vector.extract_strided_slice %0 {offsets = [0, 7], sizes = [8, 1], strides = [1, 1]} : vector<8x52xf32> to vector<8x1xf32>
    %203 = vector.broadcast %202 : vector<8x1xf32> to vector<8x128xf32>
    %204 = arith.subf %3, %203 : vector<8x128xf32>
    %205 = vector.broadcast %200 : vector<8x1xf32> to vector<8x128xf32>
    %206 = arith.mulf %204, %205 : vector<8x128xf32>
    %207 = arith.mulf %206, %79 : vector<8x128xf32>
    %208 = vector.extract_strided_slice %0 {offsets = [0, 9], sizes = [8, 1], strides = [1, 1]} : vector<8x52xf32> to vector<8x1xf32>
    %209 = vector.broadcast %208 : vector<8x1xf32> to vector<8x128xf32>
    %210 = arith.subf %209, %3 : vector<8x128xf32>
    %211 = vector.broadcast %201 : vector<8x1xf32> to vector<8x128xf32>
    %212 = arith.mulf %210, %211 : vector<8x128xf32>
    %213 = arith.mulf %212, %84 : vector<8x128xf32>
    %214 = arith.addf %207, %213 : vector<8x128xf32>
    %215 = vector.extract_strided_slice %0 {offsets = [0, 20], sizes = [8, 1], strides = [1, 1]} : vector<8x52xf32> to vector<8x1xf32>
    %216 = vector.extract_strided_slice %0 {offsets = [0, 21], sizes = [8, 1], strides = [1, 1]} : vector<8x52xf32> to vector<8x1xf32>
    %217 = vector.extract_strided_slice %0 {offsets = [0, 8], sizes = [8, 1], strides = [1, 1]} : vector<8x52xf32> to vector<8x1xf32>
    %218 = vector.broadcast %217 : vector<8x1xf32> to vector<8x128xf32>
    %219 = arith.subf %3, %218 : vector<8x128xf32>
    %220 = vector.broadcast %215 : vector<8x1xf32> to vector<8x128xf32>
    %221 = arith.mulf %219, %220 : vector<8x128xf32>
    %222 = arith.mulf %221, %84 : vector<8x128xf32>
    %223 = vector.extract_strided_slice %0 {offsets = [0, 10], sizes = [8, 1], strides = [1, 1]} : vector<8x52xf32> to vector<8x1xf32>
    %224 = vector.broadcast %223 : vector<8x1xf32> to vector<8x128xf32>
    %225 = arith.subf %224, %3 : vector<8x128xf32>
    %226 = vector.broadcast %216 : vector<8x1xf32> to vector<8x128xf32>
    %227 = arith.mulf %225, %226 : vector<8x128xf32>
    %228 = arith.mulf %227, %89 : vector<8x128xf32>
    %229 = arith.addf %222, %228 : vector<8x128xf32>
    %230 = vector.extract_strided_slice %0 {offsets = [0, 21], sizes = [8, 1], strides = [1, 1]} : vector<8x52xf32> to vector<8x1xf32>
    %231 = vector.extract_strided_slice %0 {offsets = [0, 22], sizes = [8, 1], strides = [1, 1]} : vector<8x52xf32> to vector<8x1xf32>
    %232 = vector.extract_strided_slice %0 {offsets = [0, 9], sizes = [8, 1], strides = [1, 1]} : vector<8x52xf32> to vector<8x1xf32>
    %233 = vector.broadcast %232 : vector<8x1xf32> to vector<8x128xf32>
    %234 = arith.subf %3, %233 : vector<8x128xf32>
    %235 = vector.broadcast %230 : vector<8x1xf32> to vector<8x128xf32>
    %236 = arith.mulf %234, %235 : vector<8x128xf32>
    %237 = arith.mulf %236, %89 : vector<8x128xf32>
    %238 = vector.extract_strided_slice %0 {offsets = [0, 11], sizes = [8, 1], strides = [1, 1]} : vector<8x52xf32> to vector<8x1xf32>
    %239 = vector.broadcast %238 : vector<8x1xf32> to vector<8x128xf32>
    %240 = arith.subf %239, %3 : vector<8x128xf32>
    %241 = vector.broadcast %231 : vector<8x1xf32> to vector<8x128xf32>
    %242 = arith.mulf %240, %241 : vector<8x128xf32>
    %243 = arith.mulf %242, %94 : vector<8x128xf32>
    %244 = arith.addf %237, %243 : vector<8x128xf32>
    %245 = vector.extract_strided_slice %0 {offsets = [0, 23], sizes = [8, 1], strides = [1, 1]} : vector<8x52xf32> to vector<8x1xf32>
    %246 = vector.extract_strided_slice %0 {offsets = [0, 24], sizes = [8, 1], strides = [1, 1]} : vector<8x52xf32> to vector<8x1xf32>
    %247 = vector.extract_strided_slice %0 {offsets = [0, 0], sizes = [8, 1], strides = [1, 1]} : vector<8x52xf32> to vector<8x1xf32>
    %248 = vector.broadcast %247 : vector<8x1xf32> to vector<8x128xf32>
    %249 = arith.subf %3, %248 : vector<8x128xf32>
    %250 = vector.broadcast %245 : vector<8x1xf32> to vector<8x128xf32>
    %251 = arith.mulf %249, %250 : vector<8x128xf32>
    %252 = arith.mulf %251, %109 : vector<8x128xf32>
    %253 = vector.extract_strided_slice %0 {offsets = [0, 3], sizes = [8, 1], strides = [1, 1]} : vector<8x52xf32> to vector<8x1xf32>
    %254 = vector.broadcast %253 : vector<8x1xf32> to vector<8x128xf32>
    %255 = arith.subf %254, %3 : vector<8x128xf32>
    %256 = vector.broadcast %246 : vector<8x1xf32> to vector<8x128xf32>
    %257 = arith.mulf %255, %256 : vector<8x128xf32>
    %258 = arith.mulf %257, %124 : vector<8x128xf32>
    %259 = arith.addf %252, %258 : vector<8x128xf32>
    %260 = vector.extract_strided_slice %0 {offsets = [0, 24], sizes = [8, 1], strides = [1, 1]} : vector<8x52xf32> to vector<8x1xf32>
    %261 = vector.extract_strided_slice %0 {offsets = [0, 25], sizes = [8, 1], strides = [1, 1]} : vector<8x52xf32> to vector<8x1xf32>
    %262 = vector.extract_strided_slice %0 {offsets = [0, 1], sizes = [8, 1], strides = [1, 1]} : vector<8x52xf32> to vector<8x1xf32>
    %263 = vector.broadcast %262 : vector<8x1xf32> to vector<8x128xf32>
    %264 = arith.subf %3, %263 : vector<8x128xf32>
    %265 = vector.broadcast %260 : vector<8x1xf32> to vector<8x128xf32>
    %266 = arith.mulf %264, %265 : vector<8x128xf32>
    %267 = arith.mulf %266, %124 : vector<8x128xf32>
    %268 = vector.extract_strided_slice %0 {offsets = [0, 4], sizes = [8, 1], strides = [1, 1]} : vector<8x52xf32> to vector<8x1xf32>
    %269 = vector.broadcast %268 : vector<8x1xf32> to vector<8x128xf32>
    %270 = arith.subf %269, %3 : vector<8x128xf32>
    %271 = vector.broadcast %261 : vector<8x1xf32> to vector<8x128xf32>
    %272 = arith.mulf %270, %271 : vector<8x128xf32>
    %273 = arith.mulf %272, %139 : vector<8x128xf32>
    %274 = arith.addf %267, %273 : vector<8x128xf32>
    %275 = vector.extract_strided_slice %0 {offsets = [0, 25], sizes = [8, 1], strides = [1, 1]} : vector<8x52xf32> to vector<8x1xf32>
    %276 = vector.extract_strided_slice %0 {offsets = [0, 26], sizes = [8, 1], strides = [1, 1]} : vector<8x52xf32> to vector<8x1xf32>
    %277 = vector.extract_strided_slice %0 {offsets = [0, 2], sizes = [8, 1], strides = [1, 1]} : vector<8x52xf32> to vector<8x1xf32>
    %278 = vector.broadcast %277 : vector<8x1xf32> to vector<8x128xf32>
    %279 = arith.subf %3, %278 : vector<8x128xf32>
    %280 = vector.broadcast %275 : vector<8x1xf32> to vector<8x128xf32>
    %281 = arith.mulf %279, %280 : vector<8x128xf32>
    %282 = arith.mulf %281, %139 : vector<8x128xf32>
    %283 = vector.extract_strided_slice %0 {offsets = [0, 5], sizes = [8, 1], strides = [1, 1]} : vector<8x52xf32> to vector<8x1xf32>
    %284 = vector.broadcast %283 : vector<8x1xf32> to vector<8x128xf32>
    %285 = arith.subf %284, %3 : vector<8x128xf32>
    %286 = vector.broadcast %276 : vector<8x1xf32> to vector<8x128xf32>
    %287 = arith.mulf %285, %286 : vector<8x128xf32>
    %288 = arith.mulf %287, %154 : vector<8x128xf32>
    %289 = arith.addf %282, %288 : vector<8x128xf32>
    %290 = vector.extract_strided_slice %0 {offsets = [0, 26], sizes = [8, 1], strides = [1, 1]} : vector<8x52xf32> to vector<8x1xf32>
    %291 = vector.extract_strided_slice %0 {offsets = [0, 27], sizes = [8, 1], strides = [1, 1]} : vector<8x52xf32> to vector<8x1xf32>
    %292 = vector.extract_strided_slice %0 {offsets = [0, 3], sizes = [8, 1], strides = [1, 1]} : vector<8x52xf32> to vector<8x1xf32>
    %293 = vector.broadcast %292 : vector<8x1xf32> to vector<8x128xf32>
    %294 = arith.subf %3, %293 : vector<8x128xf32>
    %295 = vector.broadcast %290 : vector<8x1xf32> to vector<8x128xf32>
    %296 = arith.mulf %294, %295 : vector<8x128xf32>
    %297 = arith.mulf %296, %154 : vector<8x128xf32>
    %298 = vector.extract_strided_slice %0 {offsets = [0, 6], sizes = [8, 1], strides = [1, 1]} : vector<8x52xf32> to vector<8x1xf32>
    %299 = vector.broadcast %298 : vector<8x1xf32> to vector<8x128xf32>
    %300 = arith.subf %299, %3 : vector<8x128xf32>
    %301 = vector.broadcast %291 : vector<8x1xf32> to vector<8x128xf32>
    %302 = arith.mulf %300, %301 : vector<8x128xf32>
    %303 = arith.mulf %302, %169 : vector<8x128xf32>
    %304 = arith.addf %297, %303 : vector<8x128xf32>
    %305 = vector.extract_strided_slice %0 {offsets = [0, 27], sizes = [8, 1], strides = [1, 1]} : vector<8x52xf32> to vector<8x1xf32>
    %306 = vector.extract_strided_slice %0 {offsets = [0, 28], sizes = [8, 1], strides = [1, 1]} : vector<8x52xf32> to vector<8x1xf32>
    %307 = vector.extract_strided_slice %0 {offsets = [0, 4], sizes = [8, 1], strides = [1, 1]} : vector<8x52xf32> to vector<8x1xf32>
    %308 = vector.broadcast %307 : vector<8x1xf32> to vector<8x128xf32>
    %309 = arith.subf %3, %308 : vector<8x128xf32>
    %310 = vector.broadcast %305 : vector<8x1xf32> to vector<8x128xf32>
    %311 = arith.mulf %309, %310 : vector<8x128xf32>
    %312 = arith.mulf %311, %169 : vector<8x128xf32>
    %313 = vector.extract_strided_slice %0 {offsets = [0, 7], sizes = [8, 1], strides = [1, 1]} : vector<8x52xf32> to vector<8x1xf32>
    %314 = vector.broadcast %313 : vector<8x1xf32> to vector<8x128xf32>
    %315 = arith.subf %314, %3 : vector<8x128xf32>
    %316 = vector.broadcast %306 : vector<8x1xf32> to vector<8x128xf32>
    %317 = arith.mulf %315, %316 : vector<8x128xf32>
    %318 = arith.mulf %317, %184 : vector<8x128xf32>
    %319 = arith.addf %312, %318 : vector<8x128xf32>
    %320 = vector.extract_strided_slice %0 {offsets = [0, 28], sizes = [8, 1], strides = [1, 1]} : vector<8x52xf32> to vector<8x1xf32>
    %321 = vector.extract_strided_slice %0 {offsets = [0, 29], sizes = [8, 1], strides = [1, 1]} : vector<8x52xf32> to vector<8x1xf32>
    %322 = vector.extract_strided_slice %0 {offsets = [0, 5], sizes = [8, 1], strides = [1, 1]} : vector<8x52xf32> to vector<8x1xf32>
    %323 = vector.broadcast %322 : vector<8x1xf32> to vector<8x128xf32>
    %324 = arith.subf %3, %323 : vector<8x128xf32>
    %325 = vector.broadcast %320 : vector<8x1xf32> to vector<8x128xf32>
    %326 = arith.mulf %324, %325 : vector<8x128xf32>
    %327 = arith.mulf %326, %184 : vector<8x128xf32>
    %328 = vector.extract_strided_slice %0 {offsets = [0, 8], sizes = [8, 1], strides = [1, 1]} : vector<8x52xf32> to vector<8x1xf32>
    %329 = vector.broadcast %328 : vector<8x1xf32> to vector<8x128xf32>
    %330 = arith.subf %329, %3 : vector<8x128xf32>
    %331 = vector.broadcast %321 : vector<8x1xf32> to vector<8x128xf32>
    %332 = arith.mulf %330, %331 : vector<8x128xf32>
    %333 = arith.mulf %332, %199 : vector<8x128xf32>
    %334 = arith.addf %327, %333 : vector<8x128xf32>
    %335 = vector.extract_strided_slice %0 {offsets = [0, 29], sizes = [8, 1], strides = [1, 1]} : vector<8x52xf32> to vector<8x1xf32>
    %336 = vector.extract_strided_slice %0 {offsets = [0, 30], sizes = [8, 1], strides = [1, 1]} : vector<8x52xf32> to vector<8x1xf32>
    %337 = vector.extract_strided_slice %0 {offsets = [0, 6], sizes = [8, 1], strides = [1, 1]} : vector<8x52xf32> to vector<8x1xf32>
    %338 = vector.broadcast %337 : vector<8x1xf32> to vector<8x128xf32>
    %339 = arith.subf %3, %338 : vector<8x128xf32>
    %340 = vector.broadcast %335 : vector<8x1xf32> to vector<8x128xf32>
    %341 = arith.mulf %339, %340 : vector<8x128xf32>
    %342 = arith.mulf %341, %199 : vector<8x128xf32>
    %343 = vector.extract_strided_slice %0 {offsets = [0, 9], sizes = [8, 1], strides = [1, 1]} : vector<8x52xf32> to vector<8x1xf32>
    %344 = vector.broadcast %343 : vector<8x1xf32> to vector<8x128xf32>
    %345 = arith.subf %344, %3 : vector<8x128xf32>
    %346 = vector.broadcast %336 : vector<8x1xf32> to vector<8x128xf32>
    %347 = arith.mulf %345, %346 : vector<8x128xf32>
    %348 = arith.mulf %347, %214 : vector<8x128xf32>
    %349 = arith.addf %342, %348 : vector<8x128xf32>
    %350 = vector.extract_strided_slice %0 {offsets = [0, 30], sizes = [8, 1], strides = [1, 1]} : vector<8x52xf32> to vector<8x1xf32>
    %351 = vector.extract_strided_slice %0 {offsets = [0, 31], sizes = [8, 1], strides = [1, 1]} : vector<8x52xf32> to vector<8x1xf32>
    %352 = vector.extract_strided_slice %0 {offsets = [0, 7], sizes = [8, 1], strides = [1, 1]} : vector<8x52xf32> to vector<8x1xf32>
    %353 = vector.broadcast %352 : vector<8x1xf32> to vector<8x128xf32>
    %354 = arith.subf %3, %353 : vector<8x128xf32>
    %355 = vector.broadcast %350 : vector<8x1xf32> to vector<8x128xf32>
    %356 = arith.mulf %354, %355 : vector<8x128xf32>
    %357 = arith.mulf %356, %214 : vector<8x128xf32>
    %358 = vector.extract_strided_slice %0 {offsets = [0, 10], sizes = [8, 1], strides = [1, 1]} : vector<8x52xf32> to vector<8x1xf32>
    %359 = vector.broadcast %358 : vector<8x1xf32> to vector<8x128xf32>
    %360 = arith.subf %359, %3 : vector<8x128xf32>
    %361 = vector.broadcast %351 : vector<8x1xf32> to vector<8x128xf32>
    %362 = arith.mulf %360, %361 : vector<8x128xf32>
    %363 = arith.mulf %362, %229 : vector<8x128xf32>
    %364 = arith.addf %357, %363 : vector<8x128xf32>
    %365 = vector.extract_strided_slice %0 {offsets = [0, 31], sizes = [8, 1], strides = [1, 1]} : vector<8x52xf32> to vector<8x1xf32>
    %366 = vector.extract_strided_slice %0 {offsets = [0, 32], sizes = [8, 1], strides = [1, 1]} : vector<8x52xf32> to vector<8x1xf32>
    %367 = vector.extract_strided_slice %0 {offsets = [0, 8], sizes = [8, 1], strides = [1, 1]} : vector<8x52xf32> to vector<8x1xf32>
    %368 = vector.broadcast %367 : vector<8x1xf32> to vector<8x128xf32>
    %369 = arith.subf %3, %368 : vector<8x128xf32>
    %370 = vector.broadcast %365 : vector<8x1xf32> to vector<8x128xf32>
    %371 = arith.mulf %369, %370 : vector<8x128xf32>
    %372 = arith.mulf %371, %229 : vector<8x128xf32>
    %373 = vector.extract_strided_slice %0 {offsets = [0, 11], sizes = [8, 1], strides = [1, 1]} : vector<8x52xf32> to vector<8x1xf32>
    %374 = vector.broadcast %373 : vector<8x1xf32> to vector<8x128xf32>
    %375 = arith.subf %374, %3 : vector<8x128xf32>
    %376 = vector.broadcast %366 : vector<8x1xf32> to vector<8x128xf32>
    %377 = arith.mulf %375, %376 : vector<8x128xf32>
    %378 = arith.mulf %377, %244 : vector<8x128xf32>
    %379 = arith.addf %372, %378 : vector<8x128xf32>
    %380 = vector.extract_strided_slice %0 {offsets = [0, 33], sizes = [8, 1], strides = [1, 1]} : vector<8x52xf32> to vector<8x1xf32>
    %381 = vector.extract_strided_slice %0 {offsets = [0, 34], sizes = [8, 1], strides = [1, 1]} : vector<8x52xf32> to vector<8x1xf32>
    %382 = vector.extract_strided_slice %0 {offsets = [0, 0], sizes = [8, 1], strides = [1, 1]} : vector<8x52xf32> to vector<8x1xf32>
    %383 = vector.broadcast %382 : vector<8x1xf32> to vector<8x128xf32>
    %384 = arith.subf %3, %383 : vector<8x128xf32>
    %385 = vector.broadcast %380 : vector<8x1xf32> to vector<8x128xf32>
    %386 = arith.mulf %384, %385 : vector<8x128xf32>
    %387 = arith.mulf %386, %259 : vector<8x128xf32>
    %388 = vector.extract_strided_slice %0 {offsets = [0, 4], sizes = [8, 1], strides = [1, 1]} : vector<8x52xf32> to vector<8x1xf32>
    %389 = vector.broadcast %388 : vector<8x1xf32> to vector<8x128xf32>
    %390 = arith.subf %389, %3 : vector<8x128xf32>
    %391 = vector.broadcast %381 : vector<8x1xf32> to vector<8x128xf32>
    %392 = arith.mulf %390, %391 : vector<8x128xf32>
    %393 = arith.mulf %392, %274 : vector<8x128xf32>
    %394 = arith.addf %387, %393 : vector<8x128xf32>
    %395 = vector.extract_strided_slice %0 {offsets = [0, 34], sizes = [8, 1], strides = [1, 1]} : vector<8x52xf32> to vector<8x1xf32>
    %396 = vector.extract_strided_slice %0 {offsets = [0, 35], sizes = [8, 1], strides = [1, 1]} : vector<8x52xf32> to vector<8x1xf32>
    %397 = vector.extract_strided_slice %0 {offsets = [0, 1], sizes = [8, 1], strides = [1, 1]} : vector<8x52xf32> to vector<8x1xf32>
    %398 = vector.broadcast %397 : vector<8x1xf32> to vector<8x128xf32>
    %399 = arith.subf %3, %398 : vector<8x128xf32>
    %400 = vector.broadcast %395 : vector<8x1xf32> to vector<8x128xf32>
    %401 = arith.mulf %399, %400 : vector<8x128xf32>
    %402 = arith.mulf %401, %274 : vector<8x128xf32>
    %403 = vector.extract_strided_slice %0 {offsets = [0, 5], sizes = [8, 1], strides = [1, 1]} : vector<8x52xf32> to vector<8x1xf32>
    %404 = vector.broadcast %403 : vector<8x1xf32> to vector<8x128xf32>
    %405 = arith.subf %404, %3 : vector<8x128xf32>
    %406 = vector.broadcast %396 : vector<8x1xf32> to vector<8x128xf32>
    %407 = arith.mulf %405, %406 : vector<8x128xf32>
    %408 = arith.mulf %407, %289 : vector<8x128xf32>
    %409 = arith.addf %402, %408 : vector<8x128xf32>
    %410 = vector.extract_strided_slice %0 {offsets = [0, 35], sizes = [8, 1], strides = [1, 1]} : vector<8x52xf32> to vector<8x1xf32>
    %411 = vector.extract_strided_slice %0 {offsets = [0, 36], sizes = [8, 1], strides = [1, 1]} : vector<8x52xf32> to vector<8x1xf32>
    %412 = vector.extract_strided_slice %0 {offsets = [0, 2], sizes = [8, 1], strides = [1, 1]} : vector<8x52xf32> to vector<8x1xf32>
    %413 = vector.broadcast %412 : vector<8x1xf32> to vector<8x128xf32>
    %414 = arith.subf %3, %413 : vector<8x128xf32>
    %415 = vector.broadcast %410 : vector<8x1xf32> to vector<8x128xf32>
    %416 = arith.mulf %414, %415 : vector<8x128xf32>
    %417 = arith.mulf %416, %289 : vector<8x128xf32>
    %418 = vector.extract_strided_slice %0 {offsets = [0, 6], sizes = [8, 1], strides = [1, 1]} : vector<8x52xf32> to vector<8x1xf32>
    %419 = vector.broadcast %418 : vector<8x1xf32> to vector<8x128xf32>
    %420 = arith.subf %419, %3 : vector<8x128xf32>
    %421 = vector.broadcast %411 : vector<8x1xf32> to vector<8x128xf32>
    %422 = arith.mulf %420, %421 : vector<8x128xf32>
    %423 = arith.mulf %422, %304 : vector<8x128xf32>
    %424 = arith.addf %417, %423 : vector<8x128xf32>
    %425 = vector.extract_strided_slice %0 {offsets = [0, 36], sizes = [8, 1], strides = [1, 1]} : vector<8x52xf32> to vector<8x1xf32>
    %426 = vector.extract_strided_slice %0 {offsets = [0, 37], sizes = [8, 1], strides = [1, 1]} : vector<8x52xf32> to vector<8x1xf32>
    %427 = vector.extract_strided_slice %0 {offsets = [0, 3], sizes = [8, 1], strides = [1, 1]} : vector<8x52xf32> to vector<8x1xf32>
    %428 = vector.broadcast %427 : vector<8x1xf32> to vector<8x128xf32>
    %429 = arith.subf %3, %428 : vector<8x128xf32>
    %430 = vector.broadcast %425 : vector<8x1xf32> to vector<8x128xf32>
    %431 = arith.mulf %429, %430 : vector<8x128xf32>
    %432 = arith.mulf %431, %304 : vector<8x128xf32>
    %433 = vector.extract_strided_slice %0 {offsets = [0, 7], sizes = [8, 1], strides = [1, 1]} : vector<8x52xf32> to vector<8x1xf32>
    %434 = vector.broadcast %433 : vector<8x1xf32> to vector<8x128xf32>
    %435 = arith.subf %434, %3 : vector<8x128xf32>
    %436 = vector.broadcast %426 : vector<8x1xf32> to vector<8x128xf32>
    %437 = arith.mulf %435, %436 : vector<8x128xf32>
    %438 = arith.mulf %437, %319 : vector<8x128xf32>
    %439 = arith.addf %432, %438 : vector<8x128xf32>
    %440 = vector.extract_strided_slice %0 {offsets = [0, 37], sizes = [8, 1], strides = [1, 1]} : vector<8x52xf32> to vector<8x1xf32>
    %441 = vector.extract_strided_slice %0 {offsets = [0, 38], sizes = [8, 1], strides = [1, 1]} : vector<8x52xf32> to vector<8x1xf32>
    %442 = vector.extract_strided_slice %0 {offsets = [0, 4], sizes = [8, 1], strides = [1, 1]} : vector<8x52xf32> to vector<8x1xf32>
    %443 = vector.broadcast %442 : vector<8x1xf32> to vector<8x128xf32>
    %444 = arith.subf %3, %443 : vector<8x128xf32>
    %445 = vector.broadcast %440 : vector<8x1xf32> to vector<8x128xf32>
    %446 = arith.mulf %444, %445 : vector<8x128xf32>
    %447 = arith.mulf %446, %319 : vector<8x128xf32>
    %448 = vector.extract_strided_slice %0 {offsets = [0, 8], sizes = [8, 1], strides = [1, 1]} : vector<8x52xf32> to vector<8x1xf32>
    %449 = vector.broadcast %448 : vector<8x1xf32> to vector<8x128xf32>
    %450 = arith.subf %449, %3 : vector<8x128xf32>
    %451 = vector.broadcast %441 : vector<8x1xf32> to vector<8x128xf32>
    %452 = arith.mulf %450, %451 : vector<8x128xf32>
    %453 = arith.mulf %452, %334 : vector<8x128xf32>
    %454 = arith.addf %447, %453 : vector<8x128xf32>
    %455 = vector.extract_strided_slice %0 {offsets = [0, 38], sizes = [8, 1], strides = [1, 1]} : vector<8x52xf32> to vector<8x1xf32>
    %456 = vector.extract_strided_slice %0 {offsets = [0, 39], sizes = [8, 1], strides = [1, 1]} : vector<8x52xf32> to vector<8x1xf32>
    %457 = vector.extract_strided_slice %0 {offsets = [0, 5], sizes = [8, 1], strides = [1, 1]} : vector<8x52xf32> to vector<8x1xf32>
    %458 = vector.broadcast %457 : vector<8x1xf32> to vector<8x128xf32>
    %459 = arith.subf %3, %458 : vector<8x128xf32>
    %460 = vector.broadcast %455 : vector<8x1xf32> to vector<8x128xf32>
    %461 = arith.mulf %459, %460 : vector<8x128xf32>
    %462 = arith.mulf %461, %334 : vector<8x128xf32>
    %463 = vector.extract_strided_slice %0 {offsets = [0, 9], sizes = [8, 1], strides = [1, 1]} : vector<8x52xf32> to vector<8x1xf32>
    %464 = vector.broadcast %463 : vector<8x1xf32> to vector<8x128xf32>
    %465 = arith.subf %464, %3 : vector<8x128xf32>
    %466 = vector.broadcast %456 : vector<8x1xf32> to vector<8x128xf32>
    %467 = arith.mulf %465, %466 : vector<8x128xf32>
    %468 = arith.mulf %467, %349 : vector<8x128xf32>
    %469 = arith.addf %462, %468 : vector<8x128xf32>
    %470 = vector.extract_strided_slice %0 {offsets = [0, 39], sizes = [8, 1], strides = [1, 1]} : vector<8x52xf32> to vector<8x1xf32>
    %471 = vector.extract_strided_slice %0 {offsets = [0, 40], sizes = [8, 1], strides = [1, 1]} : vector<8x52xf32> to vector<8x1xf32>
    %472 = vector.extract_strided_slice %0 {offsets = [0, 6], sizes = [8, 1], strides = [1, 1]} : vector<8x52xf32> to vector<8x1xf32>
    %473 = vector.broadcast %472 : vector<8x1xf32> to vector<8x128xf32>
    %474 = arith.subf %3, %473 : vector<8x128xf32>
    %475 = vector.broadcast %470 : vector<8x1xf32> to vector<8x128xf32>
    %476 = arith.mulf %474, %475 : vector<8x128xf32>
    %477 = arith.mulf %476, %349 : vector<8x128xf32>
    %478 = vector.extract_strided_slice %0 {offsets = [0, 10], sizes = [8, 1], strides = [1, 1]} : vector<8x52xf32> to vector<8x1xf32>
    %479 = vector.broadcast %478 : vector<8x1xf32> to vector<8x128xf32>
    %480 = arith.subf %479, %3 : vector<8x128xf32>
    %481 = vector.broadcast %471 : vector<8x1xf32> to vector<8x128xf32>
    %482 = arith.mulf %480, %481 : vector<8x128xf32>
    %483 = arith.mulf %482, %364 : vector<8x128xf32>
    %484 = arith.addf %477, %483 : vector<8x128xf32>
    %485 = vector.extract_strided_slice %0 {offsets = [0, 40], sizes = [8, 1], strides = [1, 1]} : vector<8x52xf32> to vector<8x1xf32>
    %486 = vector.extract_strided_slice %0 {offsets = [0, 41], sizes = [8, 1], strides = [1, 1]} : vector<8x52xf32> to vector<8x1xf32>
    %487 = vector.extract_strided_slice %0 {offsets = [0, 7], sizes = [8, 1], strides = [1, 1]} : vector<8x52xf32> to vector<8x1xf32>
    %488 = vector.broadcast %487 : vector<8x1xf32> to vector<8x128xf32>
    %489 = arith.subf %3, %488 : vector<8x128xf32>
    %490 = vector.broadcast %485 : vector<8x1xf32> to vector<8x128xf32>
    %491 = arith.mulf %489, %490 : vector<8x128xf32>
    %492 = arith.mulf %491, %364 : vector<8x128xf32>
    %493 = vector.extract_strided_slice %0 {offsets = [0, 11], sizes = [8, 1], strides = [1, 1]} : vector<8x52xf32> to vector<8x1xf32>
    %494 = vector.broadcast %493 : vector<8x1xf32> to vector<8x128xf32>
    %495 = arith.subf %494, %3 : vector<8x128xf32>
    %496 = vector.broadcast %486 : vector<8x1xf32> to vector<8x128xf32>
    %497 = arith.mulf %495, %496 : vector<8x128xf32>
    %498 = arith.mulf %497, %379 : vector<8x128xf32>
    %499 = arith.addf %492, %498 : vector<8x128xf32>
    %cst_38 = arith.constant 0.000000e+00 : f32
    %500 = vector.broadcast %cst_38 : f32 to vector<8x128xf32>
    %501 = vector.extract_strided_slice %0 {offsets = [0, 42], sizes = [8, 1], strides = [1, 1]} : vector<8x52xf32> to vector<8x1xf32>
    %502 = vector.broadcast %501 : vector<8x1xf32> to vector<8x128xf32>
    %503 = arith.mulf %502, %394 : vector<8x128xf32>
    %504 = arith.addf %500, %503 : vector<8x128xf32>
    %505 = vector.extract_strided_slice %0 {offsets = [0, 43], sizes = [8, 1], strides = [1, 1]} : vector<8x52xf32> to vector<8x1xf32>
    %506 = vector.broadcast %505 : vector<8x1xf32> to vector<8x128xf32>
    %507 = arith.mulf %506, %409 : vector<8x128xf32>
    %508 = arith.addf %504, %507 : vector<8x128xf32>
    %509 = vector.extract_strided_slice %0 {offsets = [0, 44], sizes = [8, 1], strides = [1, 1]} : vector<8x52xf32> to vector<8x1xf32>
    %510 = vector.broadcast %509 : vector<8x1xf32> to vector<8x128xf32>
    %511 = arith.mulf %510, %424 : vector<8x128xf32>
    %512 = arith.addf %508, %511 : vector<8x128xf32>
    %513 = vector.extract_strided_slice %0 {offsets = [0, 45], sizes = [8, 1], strides = [1, 1]} : vector<8x52xf32> to vector<8x1xf32>
    %514 = vector.broadcast %513 : vector<8x1xf32> to vector<8x128xf32>
    %515 = arith.mulf %514, %439 : vector<8x128xf32>
    %516 = arith.addf %512, %515 : vector<8x128xf32>
    %517 = vector.extract_strided_slice %0 {offsets = [0, 46], sizes = [8, 1], strides = [1, 1]} : vector<8x52xf32> to vector<8x1xf32>
    %518 = vector.broadcast %517 : vector<8x1xf32> to vector<8x128xf32>
    %519 = arith.mulf %518, %454 : vector<8x128xf32>
    %520 = arith.addf %516, %519 : vector<8x128xf32>
    %521 = vector.extract_strided_slice %0 {offsets = [0, 47], sizes = [8, 1], strides = [1, 1]} : vector<8x52xf32> to vector<8x1xf32>
    %522 = vector.broadcast %521 : vector<8x1xf32> to vector<8x128xf32>
    %523 = arith.mulf %522, %469 : vector<8x128xf32>
    %524 = arith.addf %520, %523 : vector<8x128xf32>
    %525 = vector.extract_strided_slice %0 {offsets = [0, 48], sizes = [8, 1], strides = [1, 1]} : vector<8x52xf32> to vector<8x1xf32>
    %526 = vector.broadcast %525 : vector<8x1xf32> to vector<8x128xf32>
    %527 = arith.mulf %526, %484 : vector<8x128xf32>
    %528 = arith.addf %524, %527 : vector<8x128xf32>
    %529 = vector.extract_strided_slice %0 {offsets = [0, 49], sizes = [8, 1], strides = [1, 1]} : vector<8x52xf32> to vector<8x1xf32>
    %530 = vector.broadcast %529 : vector<8x1xf32> to vector<8x128xf32>
    %531 = arith.mulf %530, %499 : vector<8x128xf32>
    %532 = arith.addf %528, %531 : vector<8x128xf32>
    %cst_39 = arith.constant 0.000000e+00 : f32
    %533 = vector.broadcast %cst_39 : f32 to vector<8x128xf32>
    %534 = arith.subf %533, %3 : vector<8x128xf32>
    %535 = math.exp %534 : vector<8x128xf32>
    %cst_40 = arith.constant 1.000000e+00 : f32
    %536 = vector.broadcast %cst_40 : f32 to vector<8x128xf32>
    %537 = arith.addf %536, %535 : vector<8x128xf32>
    %538 = tpu.reciprocal %537 {approx = true} : vector<8x128xf32> -> vector<8x128xf32>
    %539 = arith.mulf %3, %538 : vector<8x128xf32>
    %540 = vector.extract_strided_slice %0 {offsets = [0, 50], sizes = [8, 1], strides = [1, 1]} : vector<8x52xf32> to vector<8x1xf32>
    %541 = vector.broadcast %540 : vector<8x1xf32> to vector<8x128xf32>
    %542 = arith.mulf %541, %539 : vector<8x128xf32>
    %543 = vector.extract_strided_slice %0 {offsets = [0, 51], sizes = [8, 1], strides = [1, 1]} : vector<8x52xf32> to vector<8x1xf32>
    %544 = vector.broadcast %543 : vector<8x1xf32> to vector<8x128xf32>
    %545 = arith.mulf %544, %532 : vector<8x128xf32>
    %546 = arith.addf %542, %545 : vector<8x128xf32>
    %c0_41 = arith.constant 0 : index
    %c0_42 = arith.constant 0 : index
    %547 = vector.load %arg4[%c0_41, %c0_42] : memref<8x8xf32, #tpu.memory_space<vmem>>, vector<8x8xf32>
    %cst_43 = arith.constant dense<0.000000e+00> : vector<8x128xf32>
    %548 = tpu.matmul %547, %546, %cst_43 {dimension_numbers = #tpu.dot_dimension_numbers<[1], [0], [0], [1], [0, 0, 1, 1], [], []>, precision = #tpu.contract_precision<fp32>} : vector<8x8xf32>, vector<8x128xf32>, vector<8x128xf32> -> vector<8x128xf32>
    %c0_44 = arith.constant 0 : index
    %c0_45 = arith.constant 0 : index
    %549 = vector.load %arg7[%c0_44, %c0_45] : memref<8x128xf32, #tpu.memory_space<vmem>>, vector<8x128xf32>
    tpu.vector_store %arg7[%c0_44, %c0_45], %548 {strides = array<i32>} : memref<8x128xf32, #tpu.memory_space<vmem>>, vector<8x128xf32>,
    %c0_46 = arith.constant 0 : index
    %c0_47 = arith.constant 0 : index
    %550 = vector.load %arg5[%c0_46, %c0_47] : memref<8x128xf32, #tpu.memory_space<vmem>>, vector<8x128xf32>
    tpu.vector_store %arg5[%c0_46, %c0_47], %532 {strides = array<i32>} : memref<8x128xf32, #tpu.memory_space<vmem>>, vector<8x128xf32>,
    %c0_48 = arith.constant 0 : index
    %c0_49 = arith.constant 0 : index
    %551 = vector.load %arg6[%c0_48, %c0_49] : memref<8x128xf32, #tpu.memory_space<vmem>>, vector<8x128xf32>
    tpu.vector_store %arg6[%c0_48, %c0_49], %546 {strides = array<i32>} : memref<8x128xf32, #tpu.memory_space<vmem>>, vector<8x128xf32>,
    return
  }
  func.func @transform_0(%arg0: i32) -> (i32, i32) {
    %c0_i32 = arith.constant 0 : i32
    %c0_i32_0 = arith.constant 0 : i32
    return %c0_i32, %arg0 : i32, i32
  }
  func.func @transform_1(%arg0: i32) -> (i32, i32) {
    %c0_i32 = arith.constant 0 : i32
    %c0_i32_0 = arith.constant 0 : i32
    %c0_i32_1 = arith.constant 0 : i32
    return %c0_i32, %c0_i32_0 : i32, i32
  }
  func.func @transform_2(%arg0: i32) -> (i32, i32) {
    %c0_i32 = arith.constant 0 : i32
    %c0_i32_0 = arith.constant 0 : i32
    %c0_i32_1 = arith.constant 0 : i32
    return %c0_i32, %c0_i32_0 : i32, i32
  }
  func.func @transform_3(%arg0: i32) -> (i32, i32) {
    %c0_i32 = arith.constant 0 : i32
    %c0_i32_0 = arith.constant 0 : i32
    %c0_i32_1 = arith.constant 0 : i32
    return %c0_i32, %c0_i32_0 : i32, i32
  }
  func.func @transform_4(%arg0: i32) -> (i32, i32) {
    %c0_i32 = arith.constant 0 : i32
    %c0_i32_0 = arith.constant 0 : i32
    return %c0_i32, %arg0 : i32, i32
  }
  func.func @transform_5(%arg0: i32) -> (i32, i32) {
    %c0_i32 = arith.constant 0 : i32
    %c0_i32_0 = arith.constant 0 : i32
    return %c0_i32, %arg0 : i32, i32
  }
  func.func @transform_6(%arg0: i32) -> (i32, i32) {
    %c0_i32 = arith.constant 0 : i32
    %c0_i32_0 = arith.constant 0 : i32
    return %c0_i32, %arg0 : i32, i32
  }
}

</mosaic_0001>

<bundles_post_ra>
// kernel: tpu_custom_call.1
= control target key start
LH: loop header
LB: loop body
LE: loop exit
PB: predicated region body
PF: predicated region fallthrough
CT: control target
= control target key end

     0   :  { %12 = vsyncpa [#allocation3], 0  ;;  %s2442_s0 = inlined_call_operand.hbm [shape: f32[8,128], index: 0, kind: input, shape index: {}]   ;;  %s2443_s1 = inlined_call_operand.hbm [shape: f32[8,52], index: 1, kind: input, shape index: {}]   ;;  %s2444_s2 = inlined_call_operand.hbm [shape: f32[8,8], index: 2, kind: input, shape index: {}]   ;;  %s2445_s3 = inlined_call_operand.hbm [shape: f32[8,8], index: 3, kind: input, shape index: {}]   ;;  %s2446_s4 = inlined_call_operand.hbm [shape: f32[8,128], index: 4, kind: output, shape index: {0}]   ;;  %s2447_s5 = inlined_call_operand.hbm [shape: f32[8,128], index: 5, kind: output, shape index: {1}]   ;;  %s2448_s6 = inlined_call_operand.hbm [shape: f32[8,128], index: 6, kind: output, shape index: {2}]  }
   0x1   :  { %13 = vsyncpa [#allocation6], 0 }
   0x2   :  { %14 = vsyncpa [#allocation9], 0 }
   0x3   :  { %15 = vsyncpa [#allocation4], 0 }
   0x4   :  { %16 = vsyncpa [#allocation12], 0  ;;  %s1806_s21 = smov [#allocation5]   ;;  %s1807_s23 = smov [#allocation2]  }
   0x5   :  { %s33_s22 = sshll.u32 %s1806_s21, 4  ;;  %s23_s24 = sshll.u32 %s1807_s23, 4  ;;  %s34_s22 = int_to_ptr.vmem [resolvable:$true] %s33_s22  ;;  %s24_s24 = int_to_ptr.vmem [resolvable:$true] %s23_s24 }
   0x6   :  { %s1664_s25 = scalar_lea.vmem %s34_s22, 128  ;;  %p1669_p1 = scmp.lt.s32.totalorder %s34_s22, %s34_s22 }
   0x7   :  { %p1665_p0 = scmp.ne.s32.totalorder %s34_s22, %s1664_s25  ;;  %p1670_p2 = scmp.lt.s32.totalorder %s1664_s25, %s1664_s25 }
   0x9   :  { %p1671_p3 = por %p1670_p2, %p1669_p1 }
   0xb   :  { %p1672_p4 = pnand %p1671_p3, %p1665_p0 }
   0xd   :  { %1675 = shalt.err (!%p1672_p4)
}
   0xe   :  { %36 = dma.hbm_to_vmem [thread:$0]  %s2443_s1, 128, %s34_s22, [#allocation6]  }
   0xf   :  { %s1684_s28 = scalar_lea.vmem %s24_s24, 128  ;;  %p1689_p6 = scmp.lt.s32.totalorder %s24_s24, %s24_s24 }
  0x10   :  { %p1685_p5 = scmp.ne.s32.totalorder %s24_s24, %s1684_s28  ;;  %p1690_p7 = scmp.lt.s32.totalorder %s1684_s28, %s1684_s28 }
  0x12   :  { %p1691_p8 = por %p1690_p7, %p1689_p6 }
  0x14   :  { %p1692_p9 = pnand %p1691_p8, %p1685_p5 }
  0x16   :  { %1695 = shalt.err (!%p1692_p9)
}
  0x17   :  { %26 = dma.hbm_to_vmem [thread:$0]  %s2442_s0, 128, %s24_s24, [#allocation3]  }
  0x18   :  { %s1808_s7 = smov [#allocation7]   ;;  %s1809_s9 = smov [#allocation8]  }
  0x19   :  { %s43_s8 = sshll.u32 %s1808_s7, 4  ;;  %s53_s10 = sshll.u32 %s1809_s9, 4  ;;  %s44_s8 = int_to_ptr.vmem [resolvable:$true] %s43_s8  ;;  %s54_s10 = int_to_ptr.vmem [resolvable:$true] %s53_s10 }
  0x1a   :  { %s1704_s11 = scalar_lea.vmem %s44_s8, 128  ;;  %p1709_p11 = scmp.lt.s32.totalorder %s44_s8, %s44_s8 }
  0x1b   :  { %p1705_p10 = scmp.ne.s32.totalorder %s44_s8, %s1704_s11  ;;  %p1710_p12 = scmp.lt.s32.totalorder %s1704_s11, %s1704_s11 }
  0x1d   :  { %p1711_p13 = por %p1710_p12, %p1709_p11 }
  0x1f   :  { %p1712_p0 = pnand %p1711_p13, %p1705_p10 }
  0x21   :  { %1715 = shalt.err (!%p1712_p0)
}
  0x22   :  { %46 = dma.hbm_to_vmem [thread:$0]  %s2444_s2, 128, %s44_s8, [#allocation6]  }
  0x23   :  { %s1724_s13 = scalar_lea.vmem %s54_s10, 128  ;;  %p1729_p2 = scmp.lt.s32.totalorder %s54_s10, %s54_s10 }
  0x24   :  { %p1725_p1 = scmp.ne.s32.totalorder %s54_s10, %s1724_s13  ;;  %p1730_p3 = scmp.lt.s32.totalorder %s1724_s13, %s1724_s13 }
  0x26   :  { %p1731_p4 = por %p1730_p3, %p1729_p2 }
  0x28   :  { %p1732_p5 = pnand %p1731_p4, %p1725_p1 }
  0x2a   :  { %1735 = shalt.err (!%p1732_p5)
}
  0x2b   :  { %56 = dma.hbm_to_vmem [thread:$0]  %s2445_s3, 128, %s54_s10, [#allocation9]  }
  0x2c   :  { %1796 = dma.done.wait [#allocation3], 128  }
  0x2d   :  { %1797 = vsyncadd [#allocation3], 4294967168 }
  0x2e   :  { %1798 = dma.done.wait [#allocation6], 256  }
  0x2f   :  { %1799 = vsyncadd [#allocation6], 4294967040 }
  0x30   :  { %1800 = dma.done.wait [#allocation9], 128  }
  0x31   :  { %1801 = vsyncadd [#allocation9], 4294967168  ;;  %v1810_v0 = vmov 2   ;;  %v2449_v1 = vmov 0.0   ;;  %vm2453_vm0 = vmmov 0   ;;  %v1813_v2 = vmov 0  }
  0x32   :  { %1601 = vset.pattern.permute.xlu1 %v1810_v0  ;;  %1477 = vmatprep.subr.mxu0 %v2449_v1  ;;  %vm72_vm1 = vcmask 64512   ;;  %v1921_v3 = vld [vmem:[#allocation5] sm:$0xff]  ;;  %v71_v4 = vld [vmem:[#allocation2] sm:$0xff]  ;;  %v70_v5 = vld [vmem:[#allocation7] sm:$0xff]  ;;  %v1814_v11 = vmov 3   ;;  %v1815_v13 = vmov 1  }
  0x33   :  { %1479 = vmatprep.mubr.msk.f32.mxu0 %vm2453_vm0, %v2449_v1  ;;  %1482 = vmatprep.subr.mxu1 %v2449_v1  ;;  %v107_v6 = vand.u32 4294901760, %v71_v4  ;;  %v74_v7 = vsel %vm72_vm1, %v70_v5, 0  ;;  %v1816_v18 = vmov 4   ;;  %v1817_v20 = vmov 5   ;;  %s1865_s2 = smov [#allocation11]   ;;  %s1866_s15 = smov [#allocation10]  }
  0x34   :  { %1484 = vmatprep.mubr.msk.f32.mxu1 %vm2453_vm0, %v2449_v1  ;;  %1599 = vset.pattern.permute.xlu0 %v1813_v2  ;;  %v142_v8 = vand.u32 4294901760, %v74_v7  ;;  %v1818_v21 = vmov 6   ;;  %v1819_v22 = vmov 12   ;;  %v1820_v23 = vmov 14   ;;  %s1425_s3 = sshll.u32 %s1865_s2, 4  ;;  %s1415_s16 = sshll.u32 %s1866_s15, 4  ;;  %s1426_s3 = int_to_ptr.vmem [resolvable:$true] %s1425_s3  ;;  %s1416_s16 = int_to_ptr.vmem [resolvable:$true] %s1415_s16 }
  0x35   :  { %534 = vperm.xlu1 %1601, %v1921_v3   ;;  %524 = vperm.xlu0 %1599, %v1921_v3   ;;  %v184_v9 = vsub.f32 %v71_v4, %v107_v6  ;;  %v1821_v24 = vmov 13   ;;  %v1822_v25 = vmov 15   ;;  %v1823_v26 = vmov 16   ;;  %s1736_s17 = scalar_lea.vmem %s1426_s3, 128  ;;  %p1741_p7 = scmp.lt.s32.totalorder %s1426_s3, %s1426_s3 }
  0x36   :  { %1478 = vmatpush3.msra.mxu0 %v107_v6  ;;  %v143_v10 = vsub.f32 %v74_v7, %v142_v8  ;;  %v1824_v27 = vmov 7   ;;  %v1825_v28 = vmov 8   ;;  %v1826_v29 = vmov 17   ;;  %p1737_p6 = scmp.ne.s32.totalorder %s1426_s3, %s1736_s17  ;;  %p1742_p8 = scmp.lt.s32.totalorder %s1736_s17, %s1736_s17 }
  0x37   :  { %1487 = vmatprep.subr.mxu0 %v2449_v1  ;;  %v185_v12 = vand.u32 4294901760, %v184_v9  ;;  %v1827_v30 = vmov 24   ;;  %v1828_v31 = vmov 18   ;;  %v1829_v32 = vmov 9  }
  0x38   :  { %v144_v14 = vand.u32 4294901760, %v143_v10  ;;  %v1830_v33 = vmov 23   ;;  %v1831_v34 = vmov 10   ;;  %v1832_v35 = vmov 25   ;;  %p1743_p9 = por %p1742_p8, %p1741_p7 }
  0x39   :  { %1602 = vset.pattern.permute.xlu1 %v1814_v11  ;;  %1600 = vset.pattern.permute.xlu0 %v1815_v13  ;;  %v186_v15 = vsub.f32 %v184_v9, %v185_v12  ;;  %v1833_v36 = vmov 33   ;;  %v1834_v37 = vmov 26   ;;  %v1835_v38 = vmov 11  }
  0x3a   :  { %539 = vperm.xlu1 %1602, %v1921_v3   ;;  %529 = vperm.xlu0 %1600, %v1921_v3   ;;  %v145_v16 = vsub.f32 %v143_v10, %v144_v14  ;;  %v1836_v39 = vmov 19   ;;  %v1837_v40 = vmov 36   ;;  %v1838_v41 = vmov 27   ;;  %p1744_p10 = pnand %p1743_p9, %p1737_p6 }
  0x3b   :  { %v187_v17 = vand.u32 4294901760, %v186_v15  ;;  %v1839_v42 = vmov 37   ;;  %v1840_v43 = vmov 20   ;;  %v1841_v44 = vmov 42  }
  0x3c   :  { %v146_v19 = vand.u32 4294901760, %v145_v16  ;;  %v1842_v45 = vmov 28   ;;  %v1843_v46 = vmov 39   ;;  %v1844_v47 = vmov 34  }
  0x3d   :  { %1483 = vmatpush3.msra.mxu1 %v187_v17  ;;  %v1845_v48 = vmov 45   ;;  %v1846_v49 = vmov 35   ;;  %v1847_v50 = vmov 47   ;;  %v1848_v51 = vmov 21  }
  0x3e   :  { %1603 = vset.pattern.permute.xlu1 %v1816_v18  ;;  %1604 = vset.pattern.permute.xlu0 %v1817_v20  ;;  %v1849_v52 = vmov 50   ;;  %v1850_v53 = vmov 29   ;;  %v1851_v54 = vmov 51   ;;  %v1852_v55 = vmov 22  }
  0x3f   :  { %544 = vperm.xlu1 %1603, %v1921_v3   ;;  %1480 = vmatmul.mubr.f32.vlgmr.msra.gmra.mxu0 %v146_v19  ;;  %v1853_v56 = vmov 30   ;;  %v1854_v57 = vmov 31   ;;  %v1855_v58 = vmov 38   ;;  %v1856_v60 = vmov 43  }
  0x40   :  { %1485 = vmatmul.mubr.f32.vlgmr.msra.gmra.mxu1 %v142_v8  ;;  %1488 = vmatpush3.msra.mxu0 %v184_v9  ;;  %v1857_v62 = vmov 32   ;;  %v1858_v0 = vmov 44   ;;  %v1859_v4 = vmov 40   ;;  %vm1864_vm5 = vmmov 1  }
  0x41   :  { %1489 = vmatprep.mubr.msk.f32.mxu0 %vm2453_vm0, %v2449_v1  ;;  %1492 = vmatprep.subr.mxu1 %v2449_v1 }
  0x42   :  { %1494 = vmatprep.mubr.msk.f32.mxu1 %vm2453_vm0, %v2449_v1  ;;  %1493 = vmatpush3.msra.mxu1 %v107_v6 }
  0x43   :  { %1605 = vset.pattern.permute.xlu1 %v1818_v21  ;;  %1490 = vmatmul.mubr.f32.vlgmr.msra.gmra.mxu0 %v143_v10  ;;  %v1862_v10 = vmov 48  }
  0x44   :  { %554 = vperm.xlu1 %1605, %v1921_v3   ;;  %1495 = vmatmul.mubr.f32.vlgmr.msra.gmra.mxu1 %v144_v14 }
  0x45   :  { %1497 = vmatprep.subr.mxu0 %v2449_v1  ;;  %1499 = vmatprep.mubr.msk.f32.mxu0 %vm2453_vm0, %v2449_v1 }
  0x46   :  { %1498 = vmatpush3.msra.mxu0 %v185_v12  ;;  %1502 = vmatprep.subr.mxu1 %v2449_v1  ;;  %v1863_v12 = vmov 49  }
  0x47   :  { %1504 = vmatprep.mubr.msk.f32.mxu1 %vm2453_vm0, %v2449_v1  ;;  %1500 = vmatmul.mubr.f32.vlgmr.msra.gmra.mxu0 %v142_v8 }
  0x48   :  { %1606 = vset.pattern.permute.xlu1 %v1819_v22  ;;  %1503 = vmatpush3.msra.mxu1 %v107_v6  ;;  %v1860_v6 = vmov 41  }
  0x49   :  { %618 = vperm.xlu1 %1606, %v1921_v3   ;;  %1505 = vmatmul.mubr.f32.vlgmr.msra.gmra.mxu1 %v142_v8  ;;  %v1861_v8 = vmov 46  }
  0x4a   :  { %549 = vperm.xlu0 %1604, %v1921_v3   ;;  %1507 = vmatprep.subr.mxu0 %v2449_v1 }
  0x4b   :  { %1509 = vmatprep.mubr.msk.f32.mxu0 %vm2453_vm0, %v2449_v1  ;;  %1512 = vmatprep.subr.mxu1 %v2449_v1 }
  0x4c   :  { %1514 = vmatprep.mubr.msk.f32.mxu1 %vm2453_vm0, %v2449_v1 }
  0x4d   :  { %1608 = vset.pattern.permute.xlu1 %v1820_v23 }
  0x4e   :  { %636 = vperm.xlu1 %1608, %v1921_v3   ;;  %1607 = vset.pattern.permute.xlu0 %v1821_v24 }
  0x4f   :  { %625 = vperm.xlu0 %1607, %v1921_v3  }
  0x52   :  { %1609 = vset.pattern.permute.xlu1 %v1822_v25 }
  0x53   :  { %647 = vperm.xlu1 %1609, %v1921_v3   ;;  %1610 = vset.pattern.permute.xlu0 %v1823_v26 }
  0x54   :  { %658 = vperm.xlu0 %1610, %v1921_v3  }
  0x57   :  { %1611 = vset.pattern.permute.xlu1 %v1824_v27 }
  0x58   :  { %559 = vperm.xlu1 %1611, %v1921_v3   ;;  %1613 = vset.pattern.permute.xlu0 %v1825_v28 }
  0x59   :  { %564 = vperm.xlu0 %1613, %v1921_v3  }
  0x5c   :  { %1612 = vset.pattern.permute.xlu1 %v1826_v29 }
  0x5d   :  { %669 = vperm.xlu1 %1612, %v1921_v3   ;;  %1616 = vset.pattern.permute.xlu0 %v1827_v30 }
  0x5e   :  { %737 = vperm.xlu0 %1616, %v1921_v3  }
  0x61   :  { %1614 = vset.pattern.permute.xlu1 %v1828_v31 }
  0x62   :  { %680 = vperm.xlu1 %1614, %v1921_v3   ;;  %1619 = vset.pattern.permute.xlu0 %v1829_v32 }
  0x63   :  { %569 = vperm.xlu0 %1619, %v1921_v3  }
  0x66   :  { %1615 = vset.pattern.permute.xlu1 %v1830_v33 }
  0x67   :  { %731 = vperm.xlu1 %1615, %v1921_v3   ;;  %1622 = vset.pattern.permute.xlu0 %v1831_v34 }
  0x68   :  { %574 = vperm.xlu0 %1622, %v1921_v3  }
  0x6b   :  { %1617 = vset.pattern.permute.xlu1 %v1832_v35 }
  0x6c   :  { %746 = vperm.xlu1 %1617, %v1921_v3   ;;  %1625 = vset.pattern.permute.xlu0 %v1833_v36 }
  0x6d   :  { %816 = vperm.xlu0 %1625, %v1921_v3  }
  0x70   :  { %1618 = vset.pattern.permute.xlu1 %v1834_v37 }
  0x71   :  { %755 = vperm.xlu1 %1618, %v1921_v3   ;;  %1628 = vset.pattern.permute.xlu0 %v1835_v38 }
  0x72   :  { %579 = vperm.xlu0 %1628, %v1921_v3  }
  0x75   :  { %1620 = vset.pattern.permute.xlu1 %v1836_v39 }
  0x76   :  { %691 = vperm.xlu1 %1620, %v1921_v3   ;;  %1631 = vset.pattern.permute.xlu0 %v1837_v40 }
  0x77   :  { %840 = vperm.xlu0 %1631, %v1921_v3  }
  0x7a   :  { %1621 = vset.pattern.permute.xlu1 %v1838_v41 }
  0x7b   :  { %764 = vperm.xlu1 %1621, %v1921_v3   ;;  %1634 = vset.pattern.permute.xlu0 %v1839_v42 }
  0x7c   :  { %849 = vperm.xlu0 %1634, %v1921_v3  }
  0x7f   :  { %1623 = vset.pattern.permute.xlu1 %v1840_v43 }
  0x80   :  { %702 = vperm.xlu1 %1623, %v1921_v3   ;;  %1637 = vset.pattern.permute.xlu0 %v1841_v44 }
  0x81   :  { %892 = vperm.xlu0 %1637, %v1921_v3  }
  0x84   :  { %1624 = vset.pattern.permute.xlu1 %v1842_v45 }
  0x85   :  { %773 = vperm.xlu1 %1624, %v1921_v3   ;;  %1640 = vset.pattern.permute.xlu0 %v1843_v46 }
  0x86   :  { %867 = vperm.xlu0 %1640, %v1921_v3  }
  0x89   :  { %1626 = vset.pattern.permute.xlu1 %v1844_v47 }
  0x8a   :  { %822 = vperm.xlu1 %1626, %v1921_v3   ;;  %1643 = vset.pattern.permute.xlu0 %v1845_v48 }
  0x8b   :  { %910 = vperm.xlu0 %1643, %v1921_v3  }
  0x8e   :  { %1627 = vset.pattern.permute.xlu1 %v1846_v49 }
  0x8f   :  { %831 = vperm.xlu1 %1627, %v1921_v3   ;;  %1646 = vset.pattern.permute.xlu0 %v1847_v50 }
  0x90   :  { %922 = vperm.xlu0 %1646, %v1921_v3  }
  0x93   :  { %1629 = vset.pattern.permute.xlu1 %v1848_v51 }
  0x94   :  { %713 = vperm.xlu1 %1629, %v1921_v3   ;;  %1649 = vset.pattern.permute.xlu0 %v1849_v52 }
  0x95   :  { %946 = vperm.xlu0 %1649, %v1921_v3  }
  0x98   :  { %1630 = vset.pattern.permute.xlu1 %v1850_v53 }
  0x99   :  { %782 = vperm.xlu1 %1630, %v1921_v3   ;;  %1651 = vset.pattern.permute.xlu0 %v1851_v54 }
  0x9d   :  { %1632 = vset.pattern.permute.xlu1 %v1852_v55 }
  0x9e   :  { %724 = vperm.xlu1 %1632, %v1921_v3  }
  0xa2   :  { %1633 = vset.pattern.permute.xlu1 %v1853_v56 }
  0xa3   :  { %791 = vperm.xlu1 %1633, %v1921_v3  }
  0xa7   :  { %1635 = vset.pattern.permute.xlu1 %v1854_v57 }
  0xa8   :  { %800 = vperm.xlu1 %1635, %v1921_v3  }
  0xac   :  { %1636 = vset.pattern.permute.xlu1 %v1855_v58 }
  0xad   :  { %858 = vperm.xlu1 %1636, %v1921_v3  }
  0xb0   :  { %v1985_v59 = vpop.permute.xlu1 %534  ;;  %v2012_v14 = vpop.permute.xlu0 %524 }
  0xb1   :  { %1638 = vset.pattern.permute.xlu1 %v1856_v60 }
  0xb2   :  { %898 = vperm.xlu1 %1638, %v1921_v3  }
  0xb5   :  { %v1988_v61 = vpop.permute.xlu1 %539  ;;  %v2018_v17 = vpop.permute.xlu0 %529 }
  0xb6   :  { %1639 = vset.pattern.permute.xlu1 %v1857_v62 }
  0xb7   :  { %809 = vperm.xlu1 %1639, %v1921_v3  }
  0xba   :  { %v1991_v63 = vpop.permute.xlu1 %544 }
  0xbb   :  { %1641 = vset.pattern.permute.xlu1 %v1858_v0 }
  0xbc   :  { %904 = vperm.xlu1 %1641, %v1921_v3  }
  0xbf   :  { %v1994_v2 = vpop.permute.xlu1 %554 }
  0xc0   :  { %1642 = vset.pattern.permute.xlu1 %v1859_v4 }
  0xc1   :  { %876 = vperm.xlu1 %1642, %v1921_v3  }
  0xc4   :  { %v1997_v5 = vpop.permute.xlu1 %618 }
  0xc5   :  { %1644 = vset.pattern.permute.xlu1 %v1860_v6  ;;  %v2022_v19 = vpop.permute.xlu0 %549 }
  0xc6   :  { %885 = vperm.xlu1 %1644, %v1921_v3  }
  0xc9   :  { %v2000_v7 = vpop.permute.xlu1 %636 }
  0xca   :  { %1645 = vset.pattern.permute.xlu1 %v1861_v8  ;;  %v2026_v21 = vpop.permute.xlu0 %625 }
  0xcb   :  { %916 = vperm.xlu1 %1645, %v1921_v3  }
  0xce   :  { %v2003_v9 = vpop.permute.xlu1 %647 }
  0xcf   :  { %1647 = vset.pattern.permute.xlu1 %v1862_v10  ;;  %v2030_v23 = vpop.permute.xlu0 %658 }
  0xd0   :  { %928 = vperm.xlu1 %1647, %v1921_v3  }
  0xd3   :  { %v2006_v11 = vpop.permute.xlu1 %559 }
  0xd4   :  { %1648 = vset.pattern.permute.xlu1 %v1863_v12  ;;  %v2034_v24 = vpop.permute.xlu0 %564 }
  0xd5   :  { %934 = vperm.xlu1 %1648, %v1921_v3  }
  0xd8   :  { %v2009_v13 = vpop.permute.xlu1 %669 }
  0xd9   :  { %1650 = vset.pattern.permute.xlu1 %v1851_v54  ;;  %v2040_v28 = vpop.permute.xlu0 %737 }
  0xda   :  { %951 = vperm.xlu1 %1650, %v1921_v3  }
  0xdd   :  { %v2014_v15 = vpop.permute.xlu1 %680 }
  0xde   :  { %v2044_v38 = vpop.permute.xlu0 %569 }
  0xe2   :  { %v2016_v16 = vpop.permute.xlu1 %731 }
  0xe3   :  { %v2050_v48 = vpop.permute.xlu0 %574 }
  0xe7   :  { %v2020_v18 = vpop.permute.xlu1 %746 }
  0xe8   :  { %v2090_v55 = vpop.permute.xlu0 %816 }
  0xec   :  { %v2024_v20 = vpop.permute.xlu1 %755 }
  0xf1   :  { %v2028_v22 = vpop.permute.xlu1 %691 }
  0xf6   :  { %v2032_v3 = vpop.permute.xlu1 %764 }
  0xfb   :  { %v2036_v25 = vpop.permute.xlu1 %702 }
  0xff   :  { %v148_v26 = vpop.f32.mrf.mxu0 }
 0x100   :  { %v2038_v27 = vpop.permute.xlu1 %773  ;;  %v224_v29 = vpop.f32.mrf.mxu1 }
 0x101   :  { %v1481_v30 = vpop.f32.mrf.mxu0  ;;  %v225_v31 = vadd.f32 %v224_v29, %v148_v26 }
 0x102   :  { %v1486_v32 = vpop.f32.mrf.mxu1 }
 0x103   :  { %v298_v33 = vpop.f32.mrf.mxu0 }
 0x104   :  { %v299_v34 = vadd.f32 %v298_v33, %v225_v31  ;;  %v372_v36 = vpop.f32.mrf.mxu1  ;;  %v2142_v33 = vpop.permute.xlu0 %579 }
 0x105   :  { %v2042_v35 = vpop.permute.xlu1 %822  ;;  %v1491_v37 = vpop.f32.mrf.mxu0 }
 0x106   :  { %v373_v39 = vadd.f32 %v372_v36, %v299_v34  ;;  %v1496_v40 = vpop.f32.mrf.mxu1 }
 0x107   :  { %v446_v41 = vpop.f32.mrf.mxu0 }
 0x108   :  { %v447_v42 = vadd.f32 %v446_v41, %v373_v39 }
 0x109   :  { %v518_v43 = vpop.f32.mrf.mxu1  ;;  %v1501_v46 = vpop.f32.mrf.mxu0 }
 0x10a   :  { %v2046_v44 = vpop.permute.xlu1 %831  ;;  %v2048_v45 = vadd.f32 %v518_v43, %v447_v42 }
 0x10b   :  { %v1506_v47 = vpop.f32.mrf.mxu1 }
 0x10c   :  { %vm537_vm2 = vcmp.ge.f32.partialorder %v2048_v45, %v1985_v59  ;;  %vm542_vm3 = vcmp.ge.f32.partialorder %v2048_v45, %v1988_v61  ;;  %vm547_vm4 = vcmp.ge.f32.partialorder %v2048_v45, %v1991_v63  ;;  %vm552_vm7 = vcmp.ge.f32.partialorder %v2048_v45, %v2022_v19 }
 0x10d   :  { %vm589_vm6 = vmxor %vm542_vm3, %vm1864_vm5  ;;  %v642_v51 = vsub.f32 %v2048_v45, %v1985_v59  ;;  %v2078_v52 = vsub.f32 %v1991_v63, %v2048_v45  ;;  %v2082_v53 = vsub.f32 %v2048_v45, %v1988_v61  ;;  %v656_v54 = vsub.f32 %v2022_v19, %v2048_v45 }
 0x10e   :  { %vm2064_vm8 = vmand %vm537_vm2, %vm589_vm6  ;;  %vm527_vm12 = vcmp.ge.f32.partialorder %v2048_v45, %v2012_v14  ;;  %vm532_vm14 = vcmp.ge.f32.partialorder %v2048_v45, %v2018_v17  ;;  %vm557_vm15 = vcmp.ge.f32.partialorder %v2048_v45, %v1994_v2  ;;  %vm567_vm6 = vcmp.ge.f32.partialorder %v2048_v45, %v2034_v24 }
 0x10f   :  { %v2068_v50 = vpop.permute.xlu1 %713  ;;  %vm592_vm9 = vmxor %vm547_vm4, %vm1864_vm5  ;;  %v2112_v57 = vsel %vm2064_vm8, 1.0, %v2449_v1  ;;  %v643_v60 = vmul.f32 %v642_v51, %v2000_v7  ;;  %v650_v62 = vmul.f32 %v2003_v9, %v2078_v52  ;;  %v2120_v0 = vsub.f32 %v2048_v45, %v2012_v14 }
 0x110   :  { %2462 = vst [vmem:[#allocation19_spill] sm:$0xff] %v2068_v50  ;;  %vm593_vm10 = vmand %vm542_vm3, %vm592_vm9  ;;  %vm562_vm3 = vcmp.ge.f32.partialorder %v2048_v45, %v2006_v11  ;;  %vm572_vm9 = vcmp.ge.f32.partialorder %v2048_v45, %v2044_v38  ;;  %v654_v4 = vmul.f32 %v2082_v53, %v2003_v9  ;;  %v661_v8 = vmul.f32 %v2030_v23, %v656_v54 }
 0x111   :  { %vm595_vm11 = vmxor %vm552_vm7, %vm1864_vm5  ;;  %v594_v58 = vsel %vm593_vm10, 1.0, %v2449_v1  ;;  %v623_v10 = vsub.f32 %v1985_v59, %v2048_v45  ;;  %v2132_v12 = vsub.f32 %v2006_v11, %v2048_v45  ;;  %v644_v26 = vmul.f32 %v643_v60, %v2112_v57 }
 0x112   :  { %vm596_vm13 = vmand %vm547_vm4, %vm595_vm11  ;;  %v651_v29 = vmul.f32 %v650_v62, %v594_v58  ;;  %v2137_v30 = vsub.f32 %v2048_v45, %v2018_v17  ;;  %v634_v9 = vsub.f32 %v1988_v61, %v2048_v45  ;;  %v655_v31 = vmul.f32 %v654_v4, %v594_v58 }
 0x113   :  { %v2125_v6 = vsel %vm596_vm13, 1.0, %v2449_v1  ;;  %v2146_v34 = vsub.f32 %v2048_v45, %v1991_v63  ;;  %v2150_v36 = vsub.f32 %v1994_v2, %v2048_v45  ;;  %v2154_v37 = vsub.f32 %v2048_v45, %v2022_v19  ;;  %vm2164_vm4 = vmxor %vm532_vm14, %vm1864_vm5 }
 0x114   :  { %v2105_v56 = vpop.permute.xlu1 %782  ;;  %v662_v32 = vmul.f32 %v661_v8, %v2125_v6  ;;  %v2158_v61 = vsub.f32 %v2048_v45, %v1994_v2  ;;  %v2172_v40 = vsub.f32 %v2034_v24, %v2048_v45  ;;  %v2176_v41 = vsub.f32 %v2048_v45, %v2006_v11  ;;  %vm2184_vm8 = vmxor %vm537_vm2, %vm1864_vm5 }
 0x115   :  { %v652_v42 = vadd.f32 %v651_v29, %v644_v26  ;;  %v2190_v47 = vsub.f32 %v2044_v38, %v2048_v45  ;;  %v2194_v49 = vsub.f32 %v2048_v45, %v2034_v24  ;;  %v2198_v58 = vsub.f32 %v2050_v48, %v2048_v45  ;;  %vm2204_vm2 = vmxor %vm557_vm15, %vm1864_vm5 }
 0x116   :  { %2463 = vst [vmem:[#allocation20_spill] sm:$0xff] %v2158_v61  ;;  %v2178_v43 = vadd.f32 %v662_v32, %v655_v31  ;;  %v2210_v60 = vmul.f32 %v2014_v15, %v2132_v12  ;;  %v2214_v62 = vsub.f32 %v2142_v33, %v2048_v45  ;;  %v752_v4 = vmul.f32 %v2020_v18, %v642_v51  ;;  %vm2225_vm10 = vmxor %vm562_vm3, %vm1864_vm5 }
 0x117   :  { %2469 = vst [vmem:[#allocation22_spill] sm:$0xff] %v2194_v49  ;;  %2470 = vst [vmem:[#allocation23_spill] sm:$0xff] %v2198_v58  ;;  %v758_v8 = vmul.f32 %v2024_v20, %v656_v54  ;;  %v2219_v26 = vmul.f32 %v2046_v44, %v656_v54  ;;  %v2230_v31 = vmul.f32 %v2046_v44, %v642_v51 }
 0x118   :  { %2473 = vst [vmem:[#allocation24_spill] sm:$0xff] %v2214_v62  ;;  %vm2236_vm11 = vmxor %vm567_vm6, %vm1864_vm5  ;;  %v621_v54 = vmul.f32 %v1997_v5, %v2120_v0  ;;  %v628_v1 = vmul.f32 %v2026_v21, %v623_v10  ;;  %vm577_vm13 = vcmp.ge.f32.partialorder %v2048_v45, %v2050_v48  ;;  %v753_v44 = vmul.f32 %v752_v4, %v652_v42  ;;  %v841_v10 = vpop.permute.xlu0 %840 }
 0x119   :  { %v2168_v63 = vpop.permute.xlu1 %724  ;;  %v759_v51 = vmul.f32 %v758_v8, %v2178_v43  ;;  %v639_v62 = vmul.f32 %v2000_v7, %v634_v9  ;;  %v665_v50 = vmul.f32 %v2146_v34, %v2030_v23  ;;  %vm2256_vm0 = vmand %vm527_vm12, %vm2164_vm4  ;;  %v672_v4 = vmul.f32 %v2009_v13, %v2150_v36 }
 0x11a   :  { %2466 = vst [vmem:[#allocation21_spill] sm:$0xff] %v2168_v63  ;;  %v632_v63 = vmul.f32 %v2137_v30, %v2026_v21  ;;  %v676_v7 = vmul.f32 %v2154_v37, %v2009_v13  ;;  %v687_v23 = vmul.f32 %v2158_v61, %v2014_v15  ;;  %v694_v39 = vmul.f32 %v2028_v22, %v2172_v40  ;;  %vm587_vm12 = vmand %vm532_vm14, %vm2184_vm8 }
 0x11b   :  { %vm2279_vm4 = vmxor %vm572_vm9, %vm1864_vm5  ;;  %v698_v13 = vmul.f32 %v2176_v41, %v2028_v22  ;;  %v705_v15 = vmul.f32 %v2036_v25, %v2190_v47  ;;  %v2289_v46 = vmul.f32 %v2194_v49, %v2036_v25  ;;  %v734_v17 = vmul.f32 %v2016_v16, %v2120_v0 }
 0x11c   :  { %v740_v8 = vmul.f32 %v2040_v28, %v634_v9  ;;  %v749_v58 = vmul.f32 %v2020_v18, %v2078_v52  ;;  %v2483_v61 = vmov 0.0   ;;  %vm2306_vm14 = vmand %vm552_vm7, %vm2204_vm2  ;;  %v760_v16 = vadd.f32 %v759_v51, %v753_v44 }
 0x11d   :  { %v585_v22 = vsel %vm2256_vm0, 1.0, %v2483_v61  ;;  %v588_v9 = vsel %vm587_vm12, 1.0, %v2483_v61  ;;  %v640_v49 = vmul.f32 %v639_v62, %v2112_v57  ;;  %vm2317_vm0 = vmand %vm557_vm15, %vm2225_vm10  ;;  %v761_v19 = vmul.f32 %v2024_v20, %v2082_v53 }
 0x11e   :  { %v2260_v21 = vpop.permute.xlu1 %791  ;;  %v767_v59 = vmul.f32 %v2032_v3, %v2150_v36  ;;  %v629_v44 = vmul.f32 %v628_v1, %v588_v9  ;;  %v633_v51 = vmul.f32 %v632_v63, %v588_v9  ;;  %vm605_vm7 = vmand %vm562_vm3, %vm2236_vm11  ;;  %v770_v2 = vmul.f32 %v2032_v3, %v2146_v34  ;;  %v850_v1 = vpop.permute.xlu0 %849 }
 0x11f   :  { %2480 = vst [vmem:[#allocation25_spill] sm:$0xff] %v2260_v21  ;;  %v743_v21 = vmul.f32 %v2040_v28, %v2137_v30  ;;  %v622_v28 = vmul.f32 %v621_v54, %v585_v22  ;;  %v776_v62 = vmul.f32 %v2038_v27, %v2132_v12  ;;  %v779_v20 = vmul.f32 %v2038_v27, %v2154_v37  ;;  %vm608_vm15 = vmand %vm567_vm6, %vm2279_vm4 }
 0x120   :  { %v750_v29 = vmul.f32 %v749_v58, %v652_v42  ;;  %v641_v63 = vadd.f32 %v640_v49, %v633_v51  ;;  %v600_v3 = vsel %vm2306_vm14, 1.0, %v2483_v61  ;;  %v603_v32 = vsel %vm2317_vm0, 1.0, %v2483_v61  ;;  %vm2362_vm3 = vmxor %vm577_vm13, %vm1864_vm5 }
 0x121   :  { %v630_v11 = vadd.f32 %v629_v44, %v622_v28  ;;  %v819_v27 = vmul.f32 %v2090_v55, %v2120_v0  ;;  %v825_v42 = vmul.f32 %v2042_v35, %v2078_v52  ;;  %v666_v24 = vmul.f32 %v665_v50, %v2125_v6  ;;  %vm611_vm8 = vmand %vm572_vm9, %vm2362_vm3 }
 0x122   :  { %v606_v58 = vsel %vm605_vm7, 1.0, %v2483_v61  ;;  %v741_v49 = vmul.f32 %v740_v8, %v641_v63  ;;  %v744_v5 = vmul.f32 %v743_v21, %v641_v63  ;;  %v609_v14 = vsel %vm608_vm15, 1.0, %v2483_v61 }
 0x123   :  { %v2330_v57 = vpop.permute.xlu1 %800  ;;  %v735_v54 = vmul.f32 %v734_v17, %v630_v11  ;;  %v673_v22 = vmul.f32 %v672_v4, %v600_v3  ;;  %v677_v25 = vmul.f32 %v676_v7, %v600_v3  ;;  %v684_v9 = vmul.f32 %v2210_v60, %v603_v32 }
 0x124   :  { %v688_v28 = vmul.f32 %v687_v23, %v603_v32  ;;  %v835_v55 = vmul.f32 %v2219_v26, %v760_v16  ;;  %v751_v0 = vadd.f32 %v750_v29, %v744_v5  ;;  %v695_v6 = vmul.f32 %v694_v39, %v606_v58  ;;  %v893_v23 = vpop.permute.xlu0 %892  ;;  %v2492_v29 = vld [vmem:[#allocation19_spill] sm:$0xff] }
 0x125   :  { %v742_v52 = vadd.f32 %v741_v49, %v735_v54  ;;  %v838_v21 = vmul.f32 %v2230_v31, %v760_v16  ;;  %v828_v60 = vmul.f32 %v2042_v35, %v2137_v30  ;;  %v843_v4 = vmul.f32 %v841_v10, %v2150_v36 }
 0x126   :  { %v785_v26 = vmul.f32 %v2105_v56, %v2172_v40  ;;  %vm582_vm6 = vcmp.ge.f32.partialorder %v2048_v45, %v2142_v33  ;;  %v846_v7 = vmul.f32 %v841_v10, %v2082_v53  ;;  %v699_v17 = vmul.f32 %v698_v13, %v606_v58  ;;  %v2490_v53 = vld [vmem:[#allocation20_spill] sm:$0xff] }
 0x127   :  { %v706_v8 = vmul.f32 %v705_v15, %v609_v14  ;;  %v696_v44 = vadd.f32 %v695_v6, %v688_v28  ;;  %v852_v39 = vmul.f32 %v850_v1, %v2132_v12  ;;  %v762_v35 = vmul.f32 %v761_v19, %v2178_v43  ;;  %v2491_v15 = vld [vmem:[#allocation23_spill] sm:$0xff]  ;;  %v2493_v43 = vld [vmem:[#allocation25_spill] sm:$0xff]  ;;  %vm613_vm9 = vmxor %vm582_vm6, %vm1864_vm5 }
 0x128   :  { %v859_v18 = vpop.permute.xlu1 %858  ;;  %v674_v30 = vadd.f32 %v673_v22, %v666_v24  ;;  %v685_v36 = vadd.f32 %v684_v9, %v677_v25  ;;  %v820_v31 = vmul.f32 %v819_v27, %v742_v52  ;;  %v826_v16 = vmul.f32 %v825_v42, %v751_v0  ;;  %v868_v5 = vpop.permute.xlu0 %867  ;;  %vm614_vm5 = vmand %vm577_vm13, %vm613_vm9 }
 0x129   :  { %v786_v51 = vmul.f32 %v785_v26, %v696_v44  ;;  %v788_v10 = vmul.f32 %v2105_v56, %v2490_v53  ;;  %v716_v12 = vmul.f32 %v2492_v29, %v2491_v15  ;;  %v612_v32 = vsel %vm611_vm8, 1.0, %v2483_v61 }
 0x12a   :  { %v768_v11 = vmul.f32 %v767_v59, %v674_v30  ;;  %v771_v63 = vmul.f32 %v770_v2, %v674_v30  ;;  %v777_v3 = vmul.f32 %v776_v62, %v685_v36  ;;  %v780_v58 = vmul.f32 %v779_v20, %v685_v36 }
 0x12b   :  { %v707_v54 = vadd.f32 %v706_v8, %v699_v17  ;;  %v794_v19 = vmul.f32 %v2493_v43, %v2190_v47  ;;  %v855_v27 = vmul.f32 %v850_v1, %v2146_v34  ;;  %v829_v42 = vmul.f32 %v828_v60, %v751_v0 }
 0x12c   :  { %v769_v24 = vadd.f32 %v768_v11, %v762_v35  ;;  %v778_v49 = vadd.f32 %v777_v3, %v771_v63  ;;  %v827_v56 = vadd.f32 %v826_v16, %v820_v31  ;;  %v789_v22 = vmul.f32 %v788_v10, %v696_v44  ;;  %v2494_v16 = vld [vmem:[#allocation24_spill] sm:$0xff] }
 0x12d   :  { %v899_v13 = vpop.permute.xlu1 %898  ;;  %v795_v25 = vmul.f32 %v794_v19, %v707_v54  ;;  %v787_v9 = vadd.f32 %v786_v51, %v780_v58  ;;  %v870_v59 = vmul.f32 %v868_v5, %v2190_v47  ;;  %v717_v2 = vmul.f32 %v716_v12, %v612_v32  ;;  %v2495_v51 = vld [vmem:[#allocation21_spill] sm:$0xff] }
 0x12e   :  { %v847_v62 = vmul.f32 %v846_v7, %v769_v24  ;;  %v853_v28 = vmul.f32 %v852_v39, %v778_v49  ;;  %v710_v50 = vmul.f32 %v2289_v46, %v609_v14  ;;  %v844_v52 = vmul.f32 %v843_v4, %v769_v24  ;;  %v911_v39 = vpop.permute.xlu0 %910 }
 0x12f   :  { %v796_v6 = vadd.f32 %v795_v25, %v789_v22  ;;  %v861_v34 = vmul.f32 %v859_v18, %v2172_v40  ;;  %v864_v0 = vmul.f32 %v859_v18, %v2154_v37  ;;  %v836_v60 = vadd.f32 %v835_v55, %v829_v42  ;;  %v2496_v22 = vld [vmem:[#allocation22_spill] sm:$0xff] }
 0x130   :  { %v854_v1 = vadd.f32 %v853_v28, %v847_v62  ;;  %v939_v26 = vsub.f32 0.0, %v2048_v45  ;;  %v895_v17 = vmul.f32 %v893_v23, %v827_v56  ;;  %v856_v8 = vmul.f32 %v855_v27, %v778_v49 }
 0x131   :  { %v803_v47 = vmul.f32 %v2330_v57, %v2491_v15  ;;  %v862_v7 = vmul.f32 %v861_v34, %v787_v9  ;;  %v865_v46 = vmul.f32 %v864_v0, %v787_v9  ;;  %v901_v14 = vmul.f32 %v899_v13, %v836_v60  ;;  %v956_v9 = vld [vmem:[#allocation8] sm:$0xff] }
 0x132   :  { %v810_v20 = vpop.permute.xlu1 %809  ;;  %v871_v40 = vmul.f32 %v870_v59, %v796_v6  ;;  %v940_v4 = vmul.f32 1.442695, %v939_v26  ;;  %v797_v37 = vmul.f32 %v2493_v43, %v2176_v41  ;;  %v718_v18 = vadd.f32 %v717_v2, %v710_v50 }
 0x133   :  { %v845_v23 = vadd.f32 %v844_v52, %v838_v21  ;;  %v863_v44 = vadd.f32 %v862_v7, %v856_v8  ;;  %v719_v30 = vsub.f32 %v2048_v45, %v2044_v38  ;;  %v902_v36 = vadd.f32 %v901_v14, %v895_v17 }
 0x134   :  { %v872_v35 = vadd.f32 %v871_v40, %v865_v46  ;;  %1652 = vpow2.f32 %v940_v4  ;;  %v804_v33 = vmul.f32 %v803_v47, %v718_v18  ;;  %v727_v10 = vmul.f32 %v2495_v51, %v2494_v16 }
 0x135   :  { %v913_v13 = vmul.f32 %v911_v39, %v854_v1  ;;  %v798_v12 = vmul.f32 %v797_v37, %v707_v54  ;;  %v873_v11 = vmul.f32 %v868_v5, %v2490_v53  ;;  %v615_v63 = vsel %vm614_vm5, 1.0, %v2483_v61 }
 0x136   :  { %v720_v38 = vmul.f32 %v719_v30, %v2492_v29  ;;  %v728_v19 = vmul.f32 %v727_v10, %v615_v63  ;;  %v812_v49 = vmul.f32 %v810_v20, %v2494_v16  ;;  %v806_v53 = vmul.f32 %v2330_v57, %v2496_v22  ;;  %v923_v29 = vpop.permute.xlu0 %922 }
 0x137   :  { %v905_v55 = vpop.permute.xlu1 %904  ;;  %v805_v58 = vadd.f32 %v804_v33, %v798_v12  ;;  %v874_v42 = vmul.f32 %v873_v11, %v796_v6  ;;  %v925_v20 = vmul.f32 %v923_v29, %v872_v35 }
 0x138   :  { %v907_v31 = vmul.f32 %v905_v55, %v845_v23  ;;  %v721_v24 = vmul.f32 %v720_v38, %v612_v32  ;;  %v958_v32 = vsel %vm72_vm1, %v956_v9, 0  ;;  %vm2497_vm1 = vmmov 0  }
 0x139   :  { %v1026_v57 = vand.u32 4294901760, %v958_v32 }
 0x13a   :  { %v908_v21 = vadd.f32 %v907_v31, %v902_v36  ;;  %v729_v5 = vadd.f32 %v728_v19, %v721_v24 }
 0x13b   :  { %v1027_v7 = vsub.f32 %v958_v32, %v1026_v57 }
 0x13c   :  { %v877_v3 = vpop.permute.xlu1 %876  ;;  %v914_v43 = vadd.f32 %v913_v13, %v908_v21  ;;  %v813_v59 = vmul.f32 %v812_v49, %v729_v5 }
 0x13d   :  { %v879_v48 = vmul.f32 %v877_v3, %v2491_v15  ;;  %v807_v15 = vmul.f32 %v806_v53, %v718_v18  ;;  %v882_v52 = vmul.f32 %v877_v3, %v2176_v41  ;;  %v1028_v4 = vand.u32 4294901760, %v1027_v7  ;;  %v947_v18 = vpop.permute.xlu0 %946 }
 0x13f   :  { %v880_v27 = vmul.f32 %v879_v48, %v805_v58  ;;  %v814_v6 = vadd.f32 %v813_v59, %v807_v15  ;;  %v883_v17 = vmul.f32 %v882_v52, %v805_v58 }
 0x141   :  { %v886_v56 = vpop.permute.xlu1 %885  ;;  %v881_v54 = vadd.f32 %v880_v27, %v874_v42  ;;  %v1653_v25 = vpop.eup %1652 }
 0x142   :  { %v942_v2 = vadd.f32 1.0, %v1653_v25  ;;  %v888_v28 = vmul.f32 %v886_v56, %v2494_v16 }
 0x144   :  { %1654 = vrcp.f32 %v942_v2  ;;  %v889_v1 = vmul.f32 %v888_v28, %v814_v6 }
 0x146   :  { %v917_v62 = vpop.permute.xlu1 %916  ;;  %v890_v47 = vadd.f32 %v889_v1, %v883_v17 }
 0x147   :  { %v919_v50 = vmul.f32 %v917_v62, %v863_v44  ;;  %v1029_v44 = vsub.f32 %v1027_v7, %v1028_v4 }
 0x149   :  { %v920_v34 = vadd.f32 %v919_v50, %v914_v43  ;;  %v1030_v30 = vand.u32 4294901760, %v1029_v44 }
 0x14b   :  { %v929_v0 = vpop.permute.xlu1 %928  ;;  %v926_v60 = vadd.f32 %v925_v20, %v920_v34 }
 0x14c   :  { %v931_v26 = vmul.f32 %v929_v0, %v881_v54 }
 0x14e   :  { %v932_v8 = vadd.f32 %v931_v26, %v926_v60 }
 0x150   :  { %v935_v46 = vpop.permute.xlu1 %934 }
 0x151   :  { %v937_v14 = vmul.f32 %v935_v46, %v890_v47  ;;  %v1655_v37 = vpop.eup %1654 }
 0x152   :  { %v944_v41 = vmul.f32 %v1655_v37, %v2048_v45 }
 0x153   :  { %v938_v40 = vadd.f32 %v937_v14, %v932_v8 }
 0x154   :  { %v949_v39 = vmul.f32 %v947_v18, %v944_v41 }
 0x155   :  { %v952_v55 = vpop.permute.xlu1 %951  ;;  %1407 = vst [vmem:[#allocation10] sm:$0xff] %v938_v40 }
 0x156   :  { %v954_v23 = vmul.f32 %v952_v55, %v938_v40 }
 0x158   :  { %v955_v35 = vadd.f32 %v954_v23, %v949_v39 }
 0x15a   :  { %v991_v33 = vand.u32 4294901760, %v955_v35  ;;  %1408 = vst [vmem:[#allocation11] sm:$0xff] %v955_v35 }
 0x15c   :  { %v1068_v36 = vsub.f32 %v955_v35, %v991_v33  ;;  %1508 = vmatpush3.msra.mxu0 %v991_v33 }
 0x15d   :  { %1510 = vmatmul.mubr.f32.vlgmr.msra.gmra.mxu0 %v1030_v30  ;;  %1517 = vmatprep.subr.mxu0 %v2483_v61 }
 0x15e   :  { %1518 = vmatpush3.msra.mxu0 %v1068_v36  ;;  %1519 = vmatprep.mubr.msk.f32.mxu0 %vm2497_vm1, %v2483_v61  ;;  %v1069_v31 = vand.u32 4294901760, %v1068_v36 }
 0x15f   :  { %1527 = vmatprep.subr.mxu0 %v2483_v61 }
 0x160   :  { %v1070_v45 = vsub.f32 %v1068_v36, %v1069_v31 }
 0x161   :  { %1520 = vmatmul.mubr.f32.vlgmr.msra.gmra.mxu0 %v1027_v7 }
 0x162   :  { %1528 = vmatpush3.msra.mxu0 %v1069_v31  ;;  %v1071_v16 = vand.u32 4294901760, %v1070_v45  ;;  %1529 = vmatprep.mubr.msk.f32.mxu0 %vm2497_vm1, %v2483_v61 }
 0x164   :  { %1513 = vmatpush3.msra.mxu1 %v1071_v16 }
 0x165   :  { %1515 = vmatmul.mubr.f32.vlgmr.msra.gmra.mxu1 %v1026_v57  ;;  %1522 = vmatprep.subr.mxu1 %v2483_v61 }
 0x166   :  { %1523 = vmatpush3.msra.mxu1 %v991_v33  ;;  %1524 = vmatprep.mubr.msk.f32.mxu1 %vm2497_vm1, %v2483_v61 }
 0x167   :  { %1532 = vmatprep.subr.mxu1 %v2483_v61  ;;  %1530 = vmatmul.mubr.f32.vlgmr.msra.gmra.mxu0 %v1026_v57 }
 0x169   :  { %1525 = vmatmul.mubr.f32.vlgmr.msra.gmra.mxu1 %v1028_v4 }
 0x16a   :  { %1533 = vmatpush3.msra.mxu1 %v991_v33  ;;  %1534 = vmatprep.mubr.msk.f32.mxu1 %vm2497_vm1, %v2483_v61 }
 0x16d   :  { %1535 = vmatmul.mubr.f32.vlgmr.msra.gmra.mxu1 %v1026_v57 }
 0x16e   :  { %1747 = shalt.err (!%p1744_p10)
}
 0x16f   :  { %1428 = dma.vmem_to_hbm [thread:$0]  %s1426_s3, 128, %s2447_s5, [#allocation12]  }
 0x170   :  { %s1756_s20 = scalar_lea.vmem %s1416_s16, 128  ;;  %p1761_p12 = scmp.lt.s32.totalorder %s1416_s16, %s1416_s16 }
 0x171   :  { %p1757_p11 = scmp.ne.s32.totalorder %s1416_s16, %s1756_s20  ;;  %p1762_p13 = scmp.lt.s32.totalorder %s1756_s20, %s1756_s20 }
 0x173   :  { %p1763_p0 = por %p1762_p13, %p1761_p12 }
 0x175   :  { %p1764_p1 = pnand %p1763_p0, %p1757_p11 }
 0x177   :  { %1767 = shalt.err (!%p1764_p1)
}
 0x178   :  { %1418 = dma.vmem_to_hbm [thread:$0]  %s1416_s16, 128, %s2446_s4, [#allocation4]  }
 0x179   :  { %s1867_s5 = smov [#allocation13]  }
 0x17a   :  { %s1435_s23 = sshll.u32 %s1867_s5, 4  ;;  %s1436_s23 = int_to_ptr.vmem [resolvable:$true] %s1435_s23 }
 0x17b   :  { %s1776_s4 = scalar_lea.vmem %s1436_s23, 128  ;;  %p1781_p3 = scmp.lt.s32.totalorder %s1436_s23, %s1436_s23 }
 0x17c   :  { %p1777_p2 = scmp.ne.s32.totalorder %s1436_s23, %s1776_s4  ;;  %p1782_p4 = scmp.lt.s32.totalorder %s1776_s4, %s1776_s4 }
 0x17e   :  { %p1783_p5 = por %p1782_p4, %p1781_p3 }
 0x180   :  { %p1784_p6 = pnand %p1783_p5, %p1777_p2 }
 0x21d   :  { %v1032_v61 = vpop.f32.mrf.mxu0 }
 0x21f   :  { %v1511_v51 = vpop.f32.mrf.mxu0 }
 0x221   :  { %v1182_v10 = vpop.f32.mrf.mxu0 }
 0x223   :  { %v1521_v13 = vpop.f32.mrf.mxu0 }
 0x225   :  { %v1108_v12 = vpop.f32.mrf.mxu1 }
 0x226   :  { %v1109_v21 = vadd.f32 %v1108_v12, %v1032_v61 }
 0x227   :  { %v1516_v11 = vpop.f32.mrf.mxu1  ;;  %v1330_v63 = vpop.f32.mrf.mxu0 }
 0x228   :  { %v1183_v3 = vadd.f32 %v1182_v10, %v1109_v21 }
 0x229   :  { %v1256_v38 = vpop.f32.mrf.mxu1  ;;  %v1531_v58 = vpop.f32.mrf.mxu0 }
 0x22a   :  { %v1257_v48 = vadd.f32 %v1256_v38, %v1183_v3 }
 0x22b   :  { %v1526_v43 = vpop.f32.mrf.mxu1 }
 0x22c   :  { %v1331_v19 = vadd.f32 %v1330_v63, %v1257_v48 }
 0x22d   :  { %v1402_v27 = vpop.f32.mrf.mxu1 }
 0x22e   :  { %v1403_v42 = vadd.f32 %v1402_v27, %v1331_v19 }
 0x22f   :  { %v1536_v24 = vpop.f32.mrf.mxu1 }
 0x230   :  { %1406 = vst [vmem:[#allocation13] sm:$0xff] %v1403_v42 }
 0x231   :  { %1787 = shalt.err (!%p1784_p6)
}
 0x232   :  { %1438 = dma.vmem_to_hbm [thread:$0]  %s1436_s23, 128, %s2448_s6, [#allocation12]  }
 0x233   :  { %1802 = dma.done.wait [#allocation4], 128  }
 0x234   :  { %1803 = vsyncadd [#allocation4], 4294967168 }
 0x235   :  { %1804 = dma.done.wait [#allocation12], 256  }
 0x236   :  { %1805 = vsyncadd [#allocation12], 4294967040 }
 0x237   :  { %1448 = vsyncpa [#allocation3], 1 }
 0x238   :  { %1449 = vsyncpa [#allocation6], 1 }
 0x239   :  { %1450 = vsyncpa [#allocation9], 1 }
 0x23a   :  { %1451 = vsyncpa [#allocation4], 1 }
 0x23b   :  { %1452 = vsyncpa [#allocation12], 1 }

</bundles_post_ra>
